<compile_context>
chip_gen: v7x
topology: tpu7x:2x2x1
jax: 0.10.0
libtpu: 0.0.40
codegen_flags: <defaults>
</compile_context>

<pallas_src>
import math
import functools

import numpy as np
import jax
import jax.numpy as jnp
from jax.experimental import pallas as pl
from jax.experimental.pallas import tpu as pltpu


# ----------------------------------------------------------------------------------
# im2col (runs in the XLA wrapper for BOTH convs).  Columns ordered (di, dj, c_in),
# rows ordered (b, oh, ow).
# ----------------------------------------------------------------------------------
def im2col(x_nhwc, kh, kw, stride, pad):
    x = jnp.pad(x_nhwc, ((0, 0), (pad, pad), (pad, pad), (0, 0)))
    B, H, W, C = x.shape
    oh = (H - kh) // stride + 1
    ow = (W - kw) // stride + 1
    patches = []
    for i in range(kh):
        for j in range(kw):
            patches.append(x[:, i:i + stride * oh:stride, j:j + stride * ow:stride, :])
    patches = jnp.concatenate(patches, axis=-1)          # (B, oh, ow, kh*kw*C)
    return patches.reshape(B * oh * ow, kh * kw * C), oh, ow


# ----------------------------------------------------------------------------------
# The single fused forward kernel.
# ----------------------------------------------------------------------------------
def _fused_forward_kernel(
    # per-batch-tile data
    p2_ref, su_ref, eps_ref, base_ref,
    # image encoder tail (conv2 as one block-diagonal matmul + FC)
    w2bd_ref, b2_ref, wfc_ref, bfc_ref,
    # state/action encoder
    suw1_ref, sub1_ref, suw2_ref, sub2_ref,
    # fused (all coupling contexts || prior hidden) projection
    ctxa_ref, ctxb_ref, ctxbias_ref,
    # conditional prior output head (mu || log_sigma)
    prw2_ref, prb2_ref,
    # couplings with permutations folded (R1 / gather / scatter / keep)
    r1_ref, g2_ref, sc_ref, keep_ref, cw2_ref, cb2_ref, cw3_ref, cb3_ref,
    # trajectory reconstruction (cumsum*std, final permutation folded, lane-padded)
    mpad_ref,
    # output: lanes [0, D) = traj, lane D = log_prob, remaining lanes zero
    out_ref,
    *, flow_length, flow_dim, hidden_dim, d2,
):
    f32 = jnp.float32

    def mm(a, w):
        # dense NN weights are bf16 (cast activation, f32 accumulate);
        # structural 0/1 matrices and the flow state stay f32.
        if w.dtype == jnp.bfloat16:
            a = a.astype(jnp.bfloat16)
        return jnp.dot(a, w, preferred_element_type=f32)

    # ----- image encoder tail: conv2 (ONE block-diag matmul) -> relu -> flatten+FC -----
    h2 = jnp.maximum(mm(p2_ref[...], w2bd_ref[...]) + b2_ref[...], 0.0)       # (TB, n_pos*c2)
    env = mm(h2, wfc_ref[...]) + bfc_ref[...]                                 # (TB, env_dim)

    # ----- state/action encoder -----
    hsu = jnp.maximum(mm(su_ref[...], suw1_ref[...]) + sub1_ref[...], 0.0)
    suc = mm(hsu, suw2_ref[...]) + sub2_ref[...]                              # (TB, env_dim)

    # ----- hoisted context: all coupling contexts + prior hidden in ONE pair of matmuls -----
    big = mm(suc, ctxa_ref[...]) + mm(env, ctxb_ref[...]) + ctxbias_ref[...]  # (TB, 160)
    ctx_w = (flow_length + 1) * hidden_dim
    ctx_all = big[:, :ctx_w]                                                  # (TB, 128)
    hp = jnp.maximum(big[:, ctx_w:], 0.0)                                     # (TB, hidden)

    # ----- conditional prior: z = mu + exp(log_sigma) * eps -----
    pout = mm(hp, prw2_ref[...]) + prb2_ref[...]                              # (TB, 2*D)
    mu = pout[:, :flow_dim]
    ls = pout[:, flow_dim:]
    eps = eps_ref[...]
    u = mu + jnp.exp(ls) * eps                                                # flow state (frame-0)
    logp = (-0.5 * jnp.sum(eps * eps, axis=1, keepdims=True)
            - jnp.sum(ls, axis=1, keepdims=True)
            - 0.5 * flow_dim * math.log(2.0 * math.pi))                       # (TB, 1)

    # ----- RealNVP couplings (RandomPermutation folded at init; ActNorm zero-init = identity) -----
    ldj = jnp.zeros_like(logp)
    for l in range(flow_length + 1):
        h = jnp.maximum(mm(u, r1_ref[l])
                        + ctx_all[:, l * hidden_dim:(l + 1) * hidden_dim], 0.0)
        r = mm(h, cw2_ref[l]) + cb2_ref[l]
        h = jnp.maximum(r, 0.0) + h                        # residual block
        st = mm(h, cw3_ref[l]) + cb3_ref[l]                # (TB, 2*d2): [shift || log-scale]
        shift = st[:, :d2]
        # TODO(synk): exact scale parameterization of flows.ResNetCouplingLayer unknown;
        # a tanh-bounded log-scale is used for numerical stability.
        logs = jnp.tanh(st[:, d2:])
        x2 = mm(u, g2_ref[l])                              # gather the "x2" coordinates (f32)
        y2 = x2 * jnp.exp(logs) + shift
        ldj = ldj - jnp.sum(logs, axis=1, keepdims=True)
        u = u * keep_ref[l] + mm(y2, sc_ref[l])            # scatter y2 back (f32)

    # ----- trajectory: start_state + cumsum*std (folded into mpad); pack traj + logp -----
    out_w = out_ref.shape[-1]
    traj = mm(u, mpad_ref[...]) + base_ref[...]            # (TB, out_w), traj in lanes [0, D)
    col = jax.lax.broadcasted_iota(jnp.int32, (1, out_w), 1)
    lp_mask = (col == flow_dim).astype(f32)
    out_ref[...] = (traj + (logp + ldj) * lp_mask).astype(out_ref.dtype)


# ----------------------------------------------------------------------------------
# The model
# ----------------------------------------------------------------------------------
class ImageRealNVPModelPallas:
    def __init__(self, state_dim=4, action_dim=2, horizon=8, image_size=(16, 16),
                 in_channels=1, env_dim=16, hidden_dim=32, flow_length=3, seed=42,
                 state_mean=None, state_std=None, action_mean=None, action_std=None):
        assert flow_length >= 1
        assert image_size[0] % 4 == 0 and image_size[1] % 4 == 0
        self.state_dim = state_dim
        self.action_dim = action_dim
        self.horizon = horizon
        self.image_size = image_size
        self.in_channels = in_channels
        self.env_dim = env_dim
        self.hidden_dim = hidden_dim
        self.flow_length = flow_length

        D = state_dim * horizon
        d1, d2 = D // 2, D - D // 2
        self.flow_dim, self.d1, self.d2 = D, d1, d2
        self.out_w = ((D + 1 + 127) // 128) * 128          # lane-dense packed output width

        # normalization buffers (module defaults)
        state_mean = np.zeros((state_dim,), np.float32) if state_mean is None \
            else np.asarray(state_mean, np.float32)
        state_std = np.ones((state_dim,), np.float32) if state_std is None \
            else np.asarray(state_std, np.float32)
        action_mean = np.zeros((action_dim,), np.float32) if action_mean is None \
            else np.asarray(action_mean, np.float32)
        action_std = np.ones((action_dim,), np.float32) if action_std is None \
            else np.asarray(action_std, np.float32)
        self.state_mean = jnp.asarray(state_mean)
        self.state_std = jnp.asarray(state_std)
        self.action_mean = jnp.asarray(action_mean)
        self.action_std = jnp.asarray(action_std)
        self.image_mean = jnp.zeros((), jnp.float32)
        self.image_std = jnp.ones((), jnp.float32)

        rng = np.random.RandomState(seed)
        bf16 = jnp.bfloat16

        def dense(fan_in, fan_out):
            w = (rng.randn(fan_in, fan_out) / math.sqrt(fan_in)).astype(np.float32)
            b = (0.01 * rng.randn(1, fan_out)).astype(np.float32)
            return w, b

        # --- Encoder ---
        # TODO(synk): Encoder source not provided; implemented as
        # conv(3x3,s2,c1)->ReLU -> conv(3x3,s2,c2)->ReLU -> flatten -> Linear(env_dim).
        c1, c2 = 8, 16
        self.enc_c1, self.enc_c2 = c1, c2
        w1, b1 = dense(9 * in_channels, c1)
        self.enc_w1 = jnp.asarray(w1)                      # conv1 runs in the XLA wrapper
        self.enc_b1 = jnp.asarray(b1)
        w2, b2 = dense(9 * c1, c2)
        fh, fw = image_size[0] // 4, image_size[1] // 4
        n_pos = fh * fw
        self.n_pos = n_pos
        kc = n_pos * 9 * c1
        self.kc = kc
        # conv2 over all spatial positions as ONE block-diagonal matmul:
        # rows ordered (pos, di, dj, c1), cols ordered (pos, c2).
        w2bd = np.zeros((kc, n_pos * c2), np.float32)
        for p in range(n_pos):
            w2bd[p * 9 * c1:(p + 1) * 9 * c1, p * c2:(p + 1) * c2] = w2
        self.w2bd = jnp.asarray(w2bd, bf16)
        self.b2t = jnp.asarray(np.tile(b2, (1, n_pos)))
        # TODO(synk): flatten order here is (position, channel); a PyTorch NCHW flatten is
        # channel-major.  Weights are synthesized, so only internal consistency matters.
        wfc, bfc = dense(n_pos * c2, env_dim)
        self.wfc = jnp.asarray(wfc, bf16)
        self.bfc = jnp.asarray(bfc)

        # --- s_u encoder: Linear -> ReLU -> Linear ---
        su_w1, su_b1 = dense(state_dim + action_dim * horizon, hidden_dim)
        su_w2, su_b2 = dense(hidden_dim, env_dim)
        self.su_w1 = jnp.asarray(su_w1, bf16)
        self.su_b1 = jnp.asarray(su_b1)
        self.su_w2 = jnp.asarray(su_w2, bf16)
        self.su_b2 = jnp.asarray(su_b2)

        # --- ConditionalPrior: MLP(context) -> (mu, log_sigma), output head kept fused ---
        pr_w1, pr_b1 = dense(2 * env_dim, hidden_dim)
        pr_w2, pr_b2 = dense(hidden_dim, 2 * D)
        self.pr_w2 = jnp.asarray(pr_w2, bf16)
        self.pr_b2 = jnp.asarray(pr_b2)

        # --- couplings (flow_length + 1) ---
        cw1x, cw1ca, cw1cb, cb1 = [], [], [], []
        cw2l, cb2l, cw3l, cb3l = [], [], [], []
        for _ in range(flow_length + 1):
            w1x, _ = dense(d1, hidden_dim)
            w1c, b1c = dense(2 * env_dim, hidden_dim)
            w2c, b2c = dense(hidden_dim, hidden_dim)
            w3c, b3c = dense(hidden_dim, 2 * d2)
            cw1x.append(w1x)
            cw1ca.append(w1c[:env_dim])
            cw1cb.append(w1c[env_dim:])
            cb1.append(b1c)
            cw2l.append(w2c)
            cb2l.append(b2c)
            cw3l.append(w3c)
            cb3l.append(b3c)

        # fused context projection: [coupling ctx layer 0 .. L || prior first layer]
        self.ctxa = jnp.asarray(np.concatenate(cw1ca + [pr_w1[:env_dim]], axis=1), bf16)
        self.ctxb = jnp.asarray(np.concatenate(cw1cb + [pr_w1[env_dim:]], axis=1), bf16)
        self.ctxbias = jnp.asarray(np.concatenate(cb1 + [pr_b1], axis=1))

        # --- RandomPermutation folded via the cumulative permutation Q_l:
        #     R1_l = Q_l[:, :d1] @ cw1x_l, G2_l = Q_l[:, d1:], SC_l = G2_l^T, keep mask.
        #     ActNorm (zero init) => identity, zero log-det (dropped).
        # TODO(synk): data-dependent ActNorm init (initialized=False) not replicated.
        perms = [rng.permutation(D) for _ in range(flow_length)]
        Q = np.eye(D, dtype=np.float32)
        R1, G2, SC, KEEP = [], [], [], []
        for l in range(flow_length + 1):
            g1 = Q[:, :d1]
            g2 = Q[:, d1:]
            R1.append(g1 @ cw1x[l])
            G2.append(g2)
            SC.append(g2.T)
            KEEP.append(g1.sum(axis=1).reshape(1, D))
            if l < flow_length:
                P = np.eye(D, dtype=np.float32)[:, perms[l]]
                Q = Q @ P
        self.R1 = jnp.asarray(np.stack(R1), bf16)
        self.G2 = jnp.asarray(np.stack(G2))
        self.SC = jnp.asarray(np.stack(SC))
        self.KEEP = jnp.asarray(np.stack(KEEP))
        self.CW2 = jnp.asarray(np.stack(cw2l), bf16)
        self.CB2 = jnp.asarray(np.stack(cb2l))
        self.CW3 = jnp.asarray(np.stack(cw3l), bf16)
        self.CB3 = jnp.asarray(np.stack(cb3l))

        # --- trajectory reconstruction: cumsum over horizon * state_std, with the final
        #     cumulative permutation folded in, padded to a lane-dense (D, out_w) matrix.
        #     base = tile(start_state) already carries state_mean exactly once, matching
        #     traj = (norm_start + cumsum)*std + mean for ANY state_mean. ---
        Lmat = np.tril(np.ones((horizon, horizon), np.float32))
        M = np.kron(Lmat.T, np.eye(state_dim, dtype=np.float32))
        M = M * np.tile(state_std, horizon)[None, :]
        mpad = np.zeros((D, self.out_w), np.float32)
        mpad[:, :D] = Q @ M
        self.mpad = jnp.asarray(mpad)

    # --------------------------------------------------------------------------
    # forward pass (reverse=False, sampling path)
    def forward(self, start_state, action, image, key):
        B = start_state.shape[0]
        T, S, D = self.horizon, self.state_dim, self.flow_dim

        # ----- normalization + conv1 + both im2cols in the XLA wrapper (one fusion,
        #       no batch-size-dependent constants anywhere) -----
        s_norm = (start_state - self.state_mean) / self.state_std
        a_norm = (action - self.action_mean) / self.action_std
        img = (image - self.image_mean) / self.image_std

        x = jnp.transpose(img, (0, 2, 3, 1))
        p1, oh, ow = im2col(x, 3, 3, 2, 1)
        h1 = jax.nn.relu(p1 @ self.enc_w1 + self.enc_b1).reshape(B, oh, ow, self.enc_c1)
        p2, _, _ = im2col(h1, 3, 3, 2, 1)                                  # (B*n_pos, 9*c1)
        p2w = p2.reshape(B, self.kc).astype(jnp.bfloat16)                  # (B, n_pos*9*c1)

        su_in = jnp.concatenate([s_norm, a_norm.reshape(B, -1)], axis=1).astype(jnp.float32)
        eps = jax.random.normal(key, (B, D), jnp.float32)
        base = jnp.tile(start_state.astype(jnp.float32), (1, T))           # (B, D)
        base_pad = jnp.pad(base, ((0, 0), (0, self.out_w - D)))            # (B, out_w)

        # ----- batch-parallel grid: weights VMEM-resident, activations pipelined -----
        tb = 128 if (B % 128 == 0) else B
        grid = (B // tb,)

        def dspec(arr):
            nd = arr.ndim
            return pl.BlockSpec((tb,) + arr.shape[1:], lambda i: (i,) + (0,) * (nd - 1))

        def wspec(arr):
            nd = arr.ndim
            return pl.BlockSpec(arr.shape, lambda i: (0,) * nd)

        data = (p2w, su_in, eps, base_pad)
        weights = (self.w2bd, self.b2t, self.wfc, self.bfc,
                   self.su_w1, self.su_b1, self.su_w2, self.su_b2,
                   self.ctxa, self.ctxb, self.ctxbias,
                   self.pr_w2, self.pr_b2,
                   self.R1, self.G2, self.SC, self.KEEP,
                   self.CW2, self.CB2, self.CW3, self.CB3,
                   self.mpad)

        kern = functools.partial(
            _fused_forward_kernel,
            flow_length=self.flow_length,
            flow_dim=D,
            hidden_dim=self.hidden_dim,
            d2=self.d2,
        )

        out = pl.pallas_call(
            kern,
            out_shape=jax.ShapeDtypeStruct((B, self.out_w), jnp.float32),
            grid=grid,
            in_specs=[dspec(a) for a in data] + [wspec(w) for w in weights],
            out_specs=pl.BlockSpec((tb, self.out_w), lambda i: (i, 0)),
            compiler_params=pltpu.CompilerParams(
                dimension_semantics=("parallel",),
                # resident weights < 1 MiB; activations per tile are tiny -> no over-reserve
                vmem_limit_bytes=16 * 1024 * 1024,
            ),
        )(*data, *weights)

        traj = out[:, :D].reshape(B, T, S)
        log_prob = out[:, D]
        return traj, log_prob


# ----------------------------------------------------------------------------------
if __name__ == "__main__":
    B, state_dim, action_dim, horizon = 2, 4, 2, 8
    image_size = (16, 16)

    model = ImageRealNVPModelPallas(state_dim=state_dim, action_dim=action_dim,
                                    horizon=horizon, image_size=image_size,
                                    in_channels=1, env_dim=16, hidden_dim=32,
                                    flow_length=3, seed=42)

    key = jax.random.PRNGKey(0)
    k1, k2, k3, k4 = jax.random.split(key, 4)
    start_state = jax.random.normal(k1, (B, state_dim), jnp.float32)
    action = jax.random.normal(k2, (B, horizon, action_dim), jnp.float32)
    image = jax.random.normal(k3, (B, 1, image_size[0], image_size[1]), jnp.float32)

    fwd = jax.jit(model.forward)
    traj, log_prob = fwd(start_state, action, image, key=k4)
    jax.block_until_ready((traj, log_prob))

    assert traj.shape == (B, horizon, state_dim)
    assert log_prob.shape == (B,)
    assert bool(jnp.all(jnp.isfinite(traj))) and bool(jnp.all(jnp.isfinite(log_prob)))
    print("KERNEL_OK")
</pallas_src>

<mosaic_0001>
module attributes {stable_mosaic.version = 11 : i64} {
  func.func @_fused_forward_kernel(%arg0: i32, %arg1: memref<2x1152xbf16, #tpu.memory_space<vmem>>, %arg2: memref<2x20xf32, #tpu.memory_space<vmem>>, %arg3: memref<2x32xf32, #tpu.memory_space<vmem>>, %arg4: memref<2x128xf32, #tpu.memory_space<vmem>>, %arg5: memref<1152x256xbf16, #tpu.memory_space<vmem>>, %arg6: memref<1x256xf32, #tpu.memory_space<vmem>>, %arg7: memref<256x16xbf16, #tpu.memory_space<vmem>>, %arg8: memref<1x16xf32, #tpu.memory_space<vmem>>, %arg9: memref<20x32xbf16, #tpu.memory_space<vmem>>, %arg10: memref<1x32xf32, #tpu.memory_space<vmem>>, %arg11: memref<32x16xbf16, #tpu.memory_space<vmem>>, %arg12: memref<1x16xf32, #tpu.memory_space<vmem>>, %arg13: memref<16x160xbf16, #tpu.memory_space<vmem>>, %arg14: memref<16x160xbf16, #tpu.memory_space<vmem>>, %arg15: memref<1x160xf32, #tpu.memory_space<vmem>>, %arg16: memref<32x64xbf16, #tpu.memory_space<vmem>>, %arg17: memref<1x64xf32, #tpu.memory_space<vmem>>, %arg18: memref<4x32x32xbf16, #tpu.memory_space<vmem>>, %arg19: memref<4x32x16xf32, #tpu.memory_space<vmem>>, %arg20: memref<4x16x32xf32, #tpu.memory_space<vmem>>, %arg21: memref<4x1x32xf32, #tpu.memory_space<vmem>>, %arg22: memref<4x32x32xbf16, #tpu.memory_space<vmem>>, %arg23: memref<4x1x32xf32, #tpu.memory_space<vmem>>, %arg24: memref<4x32x32xbf16, #tpu.memory_space<vmem>>, %arg25: memref<4x1x32xf32, #tpu.memory_space<vmem>>, %arg26: memref<32x128xf32, #tpu.memory_space<vmem>>, %arg27: memref<2x128xf32, #tpu.memory_space<vmem>>) attributes {dimension_semantics = [#tpu.dimension_semantics<parallel>], iteration_bounds = array<i64: 1>, scalar_prefetch = 0 : i64, scratch_operands = 0 : i64, tpu.core_type = #tpu.core_type<tc>, window_params = [{transform_indices = @transform_0, window_bounds = array<i64: 2, 1152>}, {transform_indices = @transform_1, window_bounds = array<i64: 2, 20>}, {transform_indices = @transform_2, window_bounds = array<i64: 2, 32>}, {transform_indices = @transform_3, window_bounds = array<i64: 2, 128>}, {pipeline_mode = #tpu.pipeline_mode<synchronous>, transform_indices = @transform_4, window_bounds = array<i64: 1152, 256>}, {pipeline_mode = #tpu.pipeline_mode<synchronous>, transform_indices = @transform_5, window_bounds = array<i64: 1, 256>}, {pipeline_mode = #tpu.pipeline_mode<synchronous>, transform_indices = @transform_6, window_bounds = array<i64: 256, 16>}, {pipeline_mode = #tpu.pipeline_mode<synchronous>, transform_indices = @transform_7, window_bounds = array<i64: 1, 16>}, {pipeline_mode = #tpu.pipeline_mode<synchronous>, transform_indices = @transform_8, window_bounds = array<i64: 20, 32>}, {pipeline_mode = #tpu.pipeline_mode<synchronous>, transform_indices = @transform_9, window_bounds = array<i64: 1, 32>}, {pipeline_mode = #tpu.pipeline_mode<synchronous>, transform_indices = @transform_10, window_bounds = array<i64: 32, 16>}, {pipeline_mode = #tpu.pipeline_mode<synchronous>, transform_indices = @transform_11, window_bounds = array<i64: 1, 16>}, {pipeline_mode = #tpu.pipeline_mode<synchronous>, transform_indices = @transform_12, window_bounds = array<i64: 16, 160>}, {pipeline_mode = #tpu.pipeline_mode<synchronous>, transform_indices = @transform_13, window_bounds = array<i64: 16, 160>}, {pipeline_mode = #tpu.pipeline_mode<synchronous>, transform_indices = @transform_14, window_bounds = array<i64: 1, 160>}, {pipeline_mode = #tpu.pipeline_mode<synchronous>, transform_indices = @transform_15, window_bounds = array<i64: 32, 64>}, {pipeline_mode = #tpu.pipeline_mode<synchronous>, transform_indices = @transform_16, window_bounds = array<i64: 1, 64>}, {pipeline_mode = #tpu.pipeline_mode<synchronous>, transform_indices = @transform_17, window_bounds = array<i64: 4, 32, 32>}, {pipeline_mode = #tpu.pipeline_mode<synchronous>, transform_indices = @transform_18, window_bounds = array<i64: 4, 32, 16>}, {pipeline_mode = #tpu.pipeline_mode<synchronous>, transform_indices = @transform_19, window_bounds = array<i64: 4, 16, 32>}, {pipeline_mode = #tpu.pipeline_mode<synchronous>, transform_indices = @transform_20, window_bounds = array<i64: 4, 1, 32>}, {pipeline_mode = #tpu.pipeline_mode<synchronous>, transform_indices = @transform_21, window_bounds = array<i64: 4, 32, 32>}, {pipeline_mode = #tpu.pipeline_mode<synchronous>, transform_indices = @transform_22, window_bounds = array<i64: 4, 1, 32>}, {pipeline_mode = #tpu.pipeline_mode<synchronous>, transform_indices = @transform_23, window_bounds = array<i64: 4, 32, 32>}, {pipeline_mode = #tpu.pipeline_mode<synchronous>, transform_indices = @transform_24, window_bounds = array<i64: 4, 1, 32>}, {pipeline_mode = #tpu.pipeline_mode<synchronous>, transform_indices = @transform_25, window_bounds = array<i64: 32, 128>}, {transform_indices = @transform_26, window_bounds = array<i64: 2, 128>}]} {
    %c0 = arith.constant 0 : index
    %c0_0 = arith.constant 0 : index
    %0 = vector.load %arg1[%c0, %c0_0] : memref<2x1152xbf16, #tpu.memory_space<vmem>>, vector<2x1152xbf16>
    %c0_1 = arith.constant 0 : index
    %c0_2 = arith.constant 0 : index
    %1 = vector.load %arg5[%c0_1, %c0_2] : memref<1152x256xbf16, #tpu.memory_space<vmem>>, vector<1152x256xbf16>
    %cst = arith.constant dense<0.000000e+00> : vector<2x256xf32>
    %2 = tpu.matmul %0, %1, %cst {dimension_numbers = #tpu.dot_dimension_numbers<[1], [0], [0], [1], [0, 0, 1, 1], [], []>} : vector<2x1152xbf16>, vector<1152x256xbf16>, vector<2x256xf32> -> vector<2x256xf32>
    %c0_3 = arith.constant 0 : index
    %c0_4 = arith.constant 0 : index
    %3 = vector.load %arg6[%c0_3, %c0_4] : memref<1x256xf32, #tpu.memory_space<vmem>>, vector<1x256xf32>
    %4 = vector.broadcast %3 : vector<1x256xf32> to vector<2x256xf32>
    %5 = arith.addf %2, %4 : vector<2x256xf32>
    %cst_5 = arith.constant 0.000000e+00 : f32
    %6 = vector.broadcast %cst_5 : f32 to vector<2x256xf32>
    %7 = arith.maximumf %5, %6 : vector<2x256xf32>
    %c0_6 = arith.constant 0 : index
    %c0_7 = arith.constant 0 : index
    %8 = vector.load %arg7[%c0_6, %c0_7] : memref<256x16xbf16, #tpu.memory_space<vmem>>, vector<256x16xbf16>
    %9 = arith.truncf %7 : vector<2x256xf32> to vector<2x256xbf16>
    %cst_8 = arith.constant dense<0.000000e+00> : vector<2x16xf32>
    %10 = tpu.matmul %9, %8, %cst_8 {dimension_numbers = #tpu.dot_dimension_numbers<[1], [0], [0], [1], [0, 0, 1, 1], [], []>} : vector<2x256xbf16>, vector<256x16xbf16>, vector<2x16xf32> -> vector<2x16xf32>
    %c0_9 = arith.constant 0 : index
    %c0_10 = arith.constant 0 : index
    %11 = vector.load %arg8[%c0_9, %c0_10] : memref<1x16xf32, #tpu.memory_space<vmem>>, vector<1x16xf32>
    %12 = vector.broadcast %11 : vector<1x16xf32> to vector<2x16xf32>
    %13 = arith.addf %10, %12 : vector<2x16xf32>
    %c0_11 = arith.constant 0 : index
    %c0_12 = arith.constant 0 : index
    %14 = vector.load %arg2[%c0_11, %c0_12] : memref<2x20xf32, #tpu.memory_space<vmem>>, vector<2x20xf32>
    %c0_13 = arith.constant 0 : index
    %c0_14 = arith.constant 0 : index
    %15 = vector.load %arg9[%c0_13, %c0_14] : memref<20x32xbf16, #tpu.memory_space<vmem>>, vector<20x32xbf16>
    %16 = arith.truncf %14 : vector<2x20xf32> to vector<2x20xbf16>
    %cst_15 = arith.constant dense<0.000000e+00> : vector<2x32xf32>
    %17 = tpu.matmul %16, %15, %cst_15 {dimension_numbers = #tpu.dot_dimension_numbers<[1], [0], [0], [1], [0, 0, 1, 1], [], []>} : vector<2x20xbf16>, vector<20x32xbf16>, vector<2x32xf32> -> vector<2x32xf32>
    %c0_16 = arith.constant 0 : index
    %c0_17 = arith.constant 0 : index
    %18 = vector.load %arg10[%c0_16, %c0_17] : memref<1x32xf32, #tpu.memory_space<vmem>>, vector<1x32xf32>
    %19 = vector.broadcast %18 : vector<1x32xf32> to vector<2x32xf32>
    %20 = arith.addf %17, %19 : vector<2x32xf32>
    %cst_18 = arith.constant 0.000000e+00 : f32
    %21 = vector.broadcast %cst_18 : f32 to vector<2x32xf32>
    %22 = arith.maximumf %20, %21 : vector<2x32xf32>
    %c0_19 = arith.constant 0 : index
    %c0_20 = arith.constant 0 : index
    %23 = vector.load %arg11[%c0_19, %c0_20] : memref<32x16xbf16, #tpu.memory_space<vmem>>, vector<32x16xbf16>
    %24 = arith.truncf %22 : vector<2x32xf32> to vector<2x32xbf16>
    %cst_21 = arith.constant dense<0.000000e+00> : vector<2x16xf32>
    %25 = tpu.matmul %24, %23, %cst_21 {dimension_numbers = #tpu.dot_dimension_numbers<[1], [0], [0], [1], [0, 0, 1, 1], [], []>} : vector<2x32xbf16>, vector<32x16xbf16>, vector<2x16xf32> -> vector<2x16xf32>
    %c0_22 = arith.constant 0 : index
    %c0_23 = arith.constant 0 : index
    %26 = vector.load %arg12[%c0_22, %c0_23] : memref<1x16xf32, #tpu.memory_space<vmem>>, vector<1x16xf32>
    %27 = vector.broadcast %26 : vector<1x16xf32> to vector<2x16xf32>
    %28 = arith.addf %25, %27 : vector<2x16xf32>
    %c0_24 = arith.constant 0 : index
    %c0_25 = arith.constant 0 : index
    %29 = vector.load %arg13[%c0_24, %c0_25] : memref<16x160xbf16, #tpu.memory_space<vmem>>, vector<16x160xbf16>
    %30 = arith.truncf %28 : vector<2x16xf32> to vector<2x16xbf16>
    %cst_26 = arith.constant dense<0.000000e+00> : vector<2x160xf32>
    %31 = tpu.matmul %30, %29, %cst_26 {dimension_numbers = #tpu.dot_dimension_numbers<[1], [0], [0], [1], [0, 0, 1, 1], [], []>} : vector<2x16xbf16>, vector<16x160xbf16>, vector<2x160xf32> -> vector<2x160xf32>
    %c0_27 = arith.constant 0 : index
    %c0_28 = arith.constant 0 : index
    %32 = vector.load %arg14[%c0_27, %c0_28] : memref<16x160xbf16, #tpu.memory_space<vmem>>, vector<16x160xbf16>
    %33 = arith.truncf %13 : vector<2x16xf32> to vector<2x16xbf16>
    %cst_29 = arith.constant dense<0.000000e+00> : vector<2x160xf32>
    %34 = tpu.matmul %33, %32, %cst_29 {dimension_numbers = #tpu.dot_dimension_numbers<[1], [0], [0], [1], [0, 0, 1, 1], [], []>} : vector<2x16xbf16>, vector<16x160xbf16>, vector<2x160xf32> -> vector<2x160xf32>
    %35 = arith.addf %31, %34 : vector<2x160xf32>
    %c0_30 = arith.constant 0 : index
    %c0_31 = arith.constant 0 : index
    %36 = vector.load %arg15[%c0_30, %c0_31] : memref<1x160xf32, #tpu.memory_space<vmem>>, vector<1x160xf32>
    %37 = vector.broadcast %36 : vector<1x160xf32> to vector<2x160xf32>
    %38 = arith.addf %35, %37 : vector<2x160xf32>
    %39 = vector.extract_strided_slice %38 {offsets = [0, 0], sizes = [2, 128], strides = [1, 1]} : vector<2x160xf32> to vector<2x128xf32>
    %40 = vector.extract_strided_slice %38 {offsets = [0, 128], sizes = [2, 32], strides = [1, 1]} : vector<2x160xf32> to vector<2x32xf32>
    %cst_32 = arith.constant 0.000000e+00 : f32
    %41 = vector.broadcast %cst_32 : f32 to vector<2x32xf32>
    %42 = arith.maximumf %40, %41 : vector<2x32xf32>
    %c0_33 = arith.constant 0 : index
    %c0_34 = arith.constant 0 : index
    %43 = vector.load %arg16[%c0_33, %c0_34] : memref<32x64xbf16, #tpu.memory_space<vmem>>, vector<32x64xbf16>
    %44 = arith.truncf %42 : vector<2x32xf32> to vector<2x32xbf16>
    %cst_35 = arith.constant dense<0.000000e+00> : vector<2x64xf32>
    %45 = tpu.matmul %44, %43, %cst_35 {dimension_numbers = #tpu.dot_dimension_numbers<[1], [0], [0], [1], [0, 0, 1, 1], [], []>} : vector<2x32xbf16>, vector<32x64xbf16>, vector<2x64xf32> -> vector<2x64xf32>
    %c0_36 = arith.constant 0 : index
    %c0_37 = arith.constant 0 : index
    %46 = vector.load %arg17[%c0_36, %c0_37] : memref<1x64xf32, #tpu.memory_space<vmem>>, vector<1x64xf32>
    %47 = vector.broadcast %46 : vector<1x64xf32> to vector<2x64xf32>
    %48 = arith.addf %45, %47 : vector<2x64xf32>
    %49 = vector.extract_strided_slice %48 {offsets = [0, 0], sizes = [2, 32], strides = [1, 1]} : vector<2x64xf32> to vector<2x32xf32>
    %50 = vector.extract_strided_slice %48 {offsets = [0, 32], sizes = [2, 32], strides = [1, 1]} : vector<2x64xf32> to vector<2x32xf32>
    %c0_38 = arith.constant 0 : index
    %c0_39 = arith.constant 0 : index
    %51 = vector.load %arg3[%c0_38, %c0_39] : memref<2x32xf32, #tpu.memory_space<vmem>>, vector<2x32xf32>
    %52 = math.exp %50 : vector<2x32xf32>
    %53 = arith.mulf %52, %51 : vector<2x32xf32>
    %54 = arith.addf %49, %53 : vector<2x32xf32>
    %55 = arith.mulf %51, %51 : vector<2x32xf32>
    %cst_40 = arith.constant dense<0.000000e+00> : vector<2xf32>
    %56 = vector.multi_reduction <add>, %55, %cst_40 [1] : vector<2x32xf32> to vector<2xf32>
    %57 = vector.shape_cast %56 : vector<2xf32> to vector<2x1xf32>
    %cst_41 = arith.constant -5.000000e-01 : f32
    %58 = vector.broadcast %cst_41 : f32 to vector<2x1xf32>
    %59 = arith.mulf %58, %57 : vector<2x1xf32>
    %cst_42 = arith.constant dense<0.000000e+00> : vector<2xf32>
    %60 = vector.multi_reduction <add>, %50, %cst_42 [1] : vector<2x32xf32> to vector<2xf32>
    %61 = vector.shape_cast %60 : vector<2xf32> to vector<2x1xf32>
    %62 = arith.subf %59, %61 : vector<2x1xf32>
    %cst_43 = arith.constant 29.4060326 : f32
    %63 = vector.broadcast %cst_43 : f32 to vector<2x1xf32>
    %64 = arith.subf %62, %63 : vector<2x1xf32>
    %cst_44 = arith.constant 0.000000e+00 : f32
    %65 = vector.broadcast %cst_44 : f32 to vector<2x1xf32>
    %c0_45 = arith.constant 0 : index
    %c0_46 = arith.constant 0 : index
    %c0_47 = arith.constant 0 : index
    %66 = vector.load %arg18[%c0_45, %c0_46, %c0_47] : memref<4x32x32xbf16, #tpu.memory_space<vmem>>, vector<1x32x32xbf16>
    %67 = vector.shape_cast %66 : vector<1x32x32xbf16> to vector<32x32xbf16>
    %68 = arith.truncf %54 : vector<2x32xf32> to vector<2x32xbf16>
    %cst_48 = arith.constant dense<0.000000e+00> : vector<2x32xf32>
    %69 = tpu.matmul %68, %67, %cst_48 {dimension_numbers = #tpu.dot_dimension_numbers<[1], [0], [0], [1], [0, 0, 1, 1], [], []>} : vector<2x32xbf16>, vector<32x32xbf16>, vector<2x32xf32> -> vector<2x32xf32>
    %70 = vector.extract_strided_slice %39 {offsets = [0, 0], sizes = [2, 32], strides = [1, 1]} : vector<2x128xf32> to vector<2x32xf32>
    %71 = arith.addf %69, %70 : vector<2x32xf32>
    %cst_49 = arith.constant 0.000000e+00 : f32
    %72 = vector.broadcast %cst_49 : f32 to vector<2x32xf32>
    %73 = arith.maximumf %71, %72 : vector<2x32xf32>
    %c0_50 = arith.constant 0 : index
    %c0_51 = arith.constant 0 : index
    %c0_52 = arith.constant 0 : index
    %74 = vector.load %arg22[%c0_50, %c0_51, %c0_52] : memref<4x32x32xbf16, #tpu.memory_space<vmem>>, vector<1x32x32xbf16>
    %75 = vector.shape_cast %74 : vector<1x32x32xbf16> to vector<32x32xbf16>
    %76 = arith.truncf %73 : vector<2x32xf32> to vector<2x32xbf16>
    %cst_53 = arith.constant dense<0.000000e+00> : vector<2x32xf32>
    %77 = tpu.matmul %76, %75, %cst_53 {dimension_numbers = #tpu.dot_dimension_numbers<[1], [0], [0], [1], [0, 0, 1, 1], [], []>} : vector<2x32xbf16>, vector<32x32xbf16>, vector<2x32xf32> -> vector<2x32xf32>
    %c0_54 = arith.constant 0 : index
    %c0_55 = arith.constant 0 : index
    %c0_56 = arith.constant 0 : index
    %78 = vector.load %arg23[%c0_54, %c0_55, %c0_56] : memref<4x1x32xf32, #tpu.memory_space<vmem>>, vector<1x1x32xf32>
    %79 = vector.shape_cast %78 : vector<1x1x32xf32> to vector<1x32xf32>
    %80 = vector.broadcast %79 : vector<1x32xf32> to vector<2x32xf32>
    %81 = arith.addf %77, %80 : vector<2x32xf32>
    %cst_57 = arith.constant 0.000000e+00 : f32
    %82 = vector.broadcast %cst_57 : f32 to vector<2x32xf32>
    %83 = arith.maximumf %81, %82 : vector<2x32xf32>
    %84 = arith.addf %83, %73 : vector<2x32xf32>
    %c0_58 = arith.constant 0 : index
    %c0_59 = arith.constant 0 : index
    %c0_60 = arith.constant 0 : index
    %85 = vector.load %arg24[%c0_58, %c0_59, %c0_60] : memref<4x32x32xbf16, #tpu.memory_space<vmem>>, vector<1x32x32xbf16>
    %86 = vector.shape_cast %85 : vector<1x32x32xbf16> to vector<32x32xbf16>
    %87 = arith.truncf %84 : vector<2x32xf32> to vector<2x32xbf16>
    %cst_61 = arith.constant dense<0.000000e+00> : vector<2x32xf32>
    %88 = tpu.matmul %87, %86, %cst_61 {dimension_numbers = #tpu.dot_dimension_numbers<[1], [0], [0], [1], [0, 0, 1, 1], [], []>} : vector<2x32xbf16>, vector<32x32xbf16>, vector<2x32xf32> -> vector<2x32xf32>
    %c0_62 = arith.constant 0 : index
    %c0_63 = arith.constant 0 : index
    %c0_64 = arith.constant 0 : index
    %89 = vector.load %arg25[%c0_62, %c0_63, %c0_64] : memref<4x1x32xf32, #tpu.memory_space<vmem>>, vector<1x1x32xf32>
    %90 = vector.shape_cast %89 : vector<1x1x32xf32> to vector<1x32xf32>
    %91 = vector.broadcast %90 : vector<1x32xf32> to vector<2x32xf32>
    %92 = arith.addf %88, %91 : vector<2x32xf32>
    %93 = vector.extract_strided_slice %92 {offsets = [0, 0], sizes = [2, 16], strides = [1, 1]} : vector<2x32xf32> to vector<2x16xf32>
    %94 = vector.extract_strided_slice %92 {offsets = [0, 16], sizes = [2, 16], strides = [1, 1]} : vector<2x32xf32> to vector<2x16xf32>
    %95 = math.tanh %94 : vector<2x16xf32>
    %c0_65 = arith.constant 0 : index
    %c0_66 = arith.constant 0 : index
    %c0_67 = arith.constant 0 : index
    %96 = vector.load %arg19[%c0_65, %c0_66, %c0_67] : memref<4x32x16xf32, #tpu.memory_space<vmem>>, vector<1x32x16xf32>
    %97 = vector.shape_cast %96 : vector<1x32x16xf32> to vector<32x16xf32>
    %cst_68 = arith.constant dense<0.000000e+00> : vector<2x16xf32>
    %98 = tpu.matmul %54, %97, %cst_68 {dimension_numbers = #tpu.dot_dimension_numbers<[1], [0], [0], [1], [0, 0, 1, 1], [], []>} : vector<2x32xf32>, vector<32x16xf32>, vector<2x16xf32> -> vector<2x16xf32>
    %99 = math.exp %95 : vector<2x16xf32>
    %100 = arith.mulf %98, %99 : vector<2x16xf32>
    %101 = arith.addf %100, %93 : vector<2x16xf32>
    %cst_69 = arith.constant dense<0.000000e+00> : vector<2xf32>
    %102 = vector.multi_reduction <add>, %95, %cst_69 [1] : vector<2x16xf32> to vector<2xf32>
    %103 = vector.shape_cast %102 : vector<2xf32> to vector<2x1xf32>
    %104 = arith.subf %65, %103 : vector<2x1xf32>
    %c0_70 = arith.constant 0 : index
    %c0_71 = arith.constant 0 : index
    %c0_72 = arith.constant 0 : index
    %105 = vector.load %arg21[%c0_70, %c0_71, %c0_72] : memref<4x1x32xf32, #tpu.memory_space<vmem>>, vector<1x1x32xf32>
    %106 = vector.shape_cast %105 : vector<1x1x32xf32> to vector<1x32xf32>
    %107 = vector.broadcast %106 : vector<1x32xf32> to vector<2x32xf32>
    %108 = arith.mulf %54, %107 : vector<2x32xf32>
    %c0_73 = arith.constant 0 : index
    %c0_74 = arith.constant 0 : index
    %c0_75 = arith.constant 0 : index
    %109 = vector.load %arg20[%c0_73, %c0_74, %c0_75] : memref<4x16x32xf32, #tpu.memory_space<vmem>>, vector<1x16x32xf32>
    %110 = vector.shape_cast %109 : vector<1x16x32xf32> to vector<16x32xf32>
    %cst_76 = arith.constant dense<0.000000e+00> : vector<2x32xf32>
    %111 = tpu.matmul %101, %110, %cst_76 {dimension_numbers = #tpu.dot_dimension_numbers<[1], [0], [0], [1], [0, 0, 1, 1], [], []>} : vector<2x16xf32>, vector<16x32xf32>, vector<2x32xf32> -> vector<2x32xf32>
    %112 = arith.addf %108, %111 : vector<2x32xf32>
    %c1 = arith.constant 1 : index
    %c0_77 = arith.constant 0 : index
    %c0_78 = arith.constant 0 : index
    %113 = vector.load %arg18[%c1, %c0_77, %c0_78] : memref<4x32x32xbf16, #tpu.memory_space<vmem>>, vector<1x32x32xbf16>
    %114 = vector.shape_cast %113 : vector<1x32x32xbf16> to vector<32x32xbf16>
    %115 = arith.truncf %112 : vector<2x32xf32> to vector<2x32xbf16>
    %cst_79 = arith.constant dense<0.000000e+00> : vector<2x32xf32>
    %116 = tpu.matmul %115, %114, %cst_79 {dimension_numbers = #tpu.dot_dimension_numbers<[1], [0], [0], [1], [0, 0, 1, 1], [], []>} : vector<2x32xbf16>, vector<32x32xbf16>, vector<2x32xf32> -> vector<2x32xf32>
    %117 = vector.extract_strided_slice %39 {offsets = [0, 32], sizes = [2, 32], strides = [1, 1]} : vector<2x128xf32> to vector<2x32xf32>
    %118 = arith.addf %116, %117 : vector<2x32xf32>
    %cst_80 = arith.constant 0.000000e+00 : f32
    %119 = vector.broadcast %cst_80 : f32 to vector<2x32xf32>
    %120 = arith.maximumf %118, %119 : vector<2x32xf32>
    %c1_81 = arith.constant 1 : index
    %c0_82 = arith.constant 0 : index
    %c0_83 = arith.constant 0 : index
    %121 = vector.load %arg22[%c1_81, %c0_82, %c0_83] : memref<4x32x32xbf16, #tpu.memory_space<vmem>>, vector<1x32x32xbf16>
    %122 = vector.shape_cast %121 : vector<1x32x32xbf16> to vector<32x32xbf16>
    %123 = arith.truncf %120 : vector<2x32xf32> to vector<2x32xbf16>
    %cst_84 = arith.constant dense<0.000000e+00> : vector<2x32xf32>
    %124 = tpu.matmul %123, %122, %cst_84 {dimension_numbers = #tpu.dot_dimension_numbers<[1], [0], [0], [1], [0, 0, 1, 1], [], []>} : vector<2x32xbf16>, vector<32x32xbf16>, vector<2x32xf32> -> vector<2x32xf32>
    %c1_85 = arith.constant 1 : index
    %c0_86 = arith.constant 0 : index
    %c0_87 = arith.constant 0 : index
    %125 = vector.load %arg23[%c1_85, %c0_86, %c0_87] : memref<4x1x32xf32, #tpu.memory_space<vmem>>, vector<1x1x32xf32>
    %126 = vector.shape_cast %125 : vector<1x1x32xf32> to vector<1x32xf32>
    %127 = vector.broadcast %126 : vector<1x32xf32> to vector<2x32xf32>
    %128 = arith.addf %124, %127 : vector<2x32xf32>
    %cst_88 = arith.constant 0.000000e+00 : f32
    %129 = vector.broadcast %cst_88 : f32 to vector<2x32xf32>
    %130 = arith.maximumf %128, %129 : vector<2x32xf32>
    %131 = arith.addf %130, %120 : vector<2x32xf32>
    %c1_89 = arith.constant 1 : index
    %c0_90 = arith.constant 0 : index
    %c0_91 = arith.constant 0 : index
    %132 = vector.load %arg24[%c1_89, %c0_90, %c0_91] : memref<4x32x32xbf16, #tpu.memory_space<vmem>>, vector<1x32x32xbf16>
    %133 = vector.shape_cast %132 : vector<1x32x32xbf16> to vector<32x32xbf16>
    %134 = arith.truncf %131 : vector<2x32xf32> to vector<2x32xbf16>
    %cst_92 = arith.constant dense<0.000000e+00> : vector<2x32xf32>
    %135 = tpu.matmul %134, %133, %cst_92 {dimension_numbers = #tpu.dot_dimension_numbers<[1], [0], [0], [1], [0, 0, 1, 1], [], []>} : vector<2x32xbf16>, vector<32x32xbf16>, vector<2x32xf32> -> vector<2x32xf32>
    %c1_93 = arith.constant 1 : index
    %c0_94 = arith.constant 0 : index
    %c0_95 = arith.constant 0 : index
    %136 = vector.load %arg25[%c1_93, %c0_94, %c0_95] : memref<4x1x32xf32, #tpu.memory_space<vmem>>, vector<1x1x32xf32>
    %137 = vector.shape_cast %136 : vector<1x1x32xf32> to vector<1x32xf32>
    %138 = vector.broadcast %137 : vector<1x32xf32> to vector<2x32xf32>
    %139 = arith.addf %135, %138 : vector<2x32xf32>
    %140 = vector.extract_strided_slice %139 {offsets = [0, 0], sizes = [2, 16], strides = [1, 1]} : vector<2x32xf32> to vector<2x16xf32>
    %141 = vector.extract_strided_slice %139 {offsets = [0, 16], sizes = [2, 16], strides = [1, 1]} : vector<2x32xf32> to vector<2x16xf32>
    %142 = math.tanh %141 : vector<2x16xf32>
    %c1_96 = arith.constant 1 : index
    %c0_97 = arith.constant 0 : index
    %c0_98 = arith.constant 0 : index
    %143 = vector.load %arg19[%c1_96, %c0_97, %c0_98] : memref<4x32x16xf32, #tpu.memory_space<vmem>>, vector<1x32x16xf32>
    %144 = vector.shape_cast %143 : vector<1x32x16xf32> to vector<32x16xf32>
    %cst_99 = arith.constant dense<0.000000e+00> : vector<2x16xf32>
    %145 = tpu.matmul %112, %144, %cst_99 {dimension_numbers = #tpu.dot_dimension_numbers<[1], [0], [0], [1], [0, 0, 1, 1], [], []>} : vector<2x32xf32>, vector<32x16xf32>, vector<2x16xf32> -> vector<2x16xf32>
    %146 = math.exp %142 : vector<2x16xf32>
    %147 = arith.mulf %145, %146 : vector<2x16xf32>
    %148 = arith.addf %147, %140 : vector<2x16xf32>
    %cst_100 = arith.constant dense<0.000000e+00> : vector<2xf32>
    %149 = vector.multi_reduction <add>, %142, %cst_100 [1] : vector<2x16xf32> to vector<2xf32>
    %150 = vector.shape_cast %149 : vector<2xf32> to vector<2x1xf32>
    %151 = arith.subf %104, %150 : vector<2x1xf32>
    %c1_101 = arith.constant 1 : index
    %c0_102 = arith.constant 0 : index
    %c0_103 = arith.constant 0 : index
    %152 = vector.load %arg21[%c1_101, %c0_102, %c0_103] : memref<4x1x32xf32, #tpu.memory_space<vmem>>, vector<1x1x32xf32>
    %153 = vector.shape_cast %152 : vector<1x1x32xf32> to vector<1x32xf32>
    %154 = vector.broadcast %153 : vector<1x32xf32> to vector<2x32xf32>
    %155 = arith.mulf %112, %154 : vector<2x32xf32>
    %c1_104 = arith.constant 1 : index
    %c0_105 = arith.constant 0 : index
    %c0_106 = arith.constant 0 : index
    %156 = vector.load %arg20[%c1_104, %c0_105, %c0_106] : memref<4x16x32xf32, #tpu.memory_space<vmem>>, vector<1x16x32xf32>
    %157 = vector.shape_cast %156 : vector<1x16x32xf32> to vector<16x32xf32>
    %cst_107 = arith.constant dense<0.000000e+00> : vector<2x32xf32>
    %158 = tpu.matmul %148, %157, %cst_107 {dimension_numbers = #tpu.dot_dimension_numbers<[1], [0], [0], [1], [0, 0, 1, 1], [], []>} : vector<2x16xf32>, vector<16x32xf32>, vector<2x32xf32> -> vector<2x32xf32>
    %159 = arith.addf %155, %158 : vector<2x32xf32>
    %c2 = arith.constant 2 : index
    %c0_108 = arith.constant 0 : index
    %c0_109 = arith.constant 0 : index
    %160 = vector.load %arg18[%c2, %c0_108, %c0_109] : memref<4x32x32xbf16, #tpu.memory_space<vmem>>, vector<1x32x32xbf16>
    %161 = vector.shape_cast %160 : vector<1x32x32xbf16> to vector<32x32xbf16>
    %162 = arith.truncf %159 : vector<2x32xf32> to vector<2x32xbf16>
    %cst_110 = arith.constant dense<0.000000e+00> : vector<2x32xf32>
    %163 = tpu.matmul %162, %161, %cst_110 {dimension_numbers = #tpu.dot_dimension_numbers<[1], [0], [0], [1], [0, 0, 1, 1], [], []>} : vector<2x32xbf16>, vector<32x32xbf16>, vector<2x32xf32> -> vector<2x32xf32>
    %164 = vector.extract_strided_slice %39 {offsets = [0, 64], sizes = [2, 32], strides = [1, 1]} : vector<2x128xf32> to vector<2x32xf32>
    %165 = arith.addf %163, %164 : vector<2x32xf32>
    %cst_111 = arith.constant 0.000000e+00 : f32
    %166 = vector.broadcast %cst_111 : f32 to vector<2x32xf32>
    %167 = arith.maximumf %165, %166 : vector<2x32xf32>
    %c2_112 = arith.constant 2 : index
    %c0_113 = arith.constant 0 : index
    %c0_114 = arith.constant 0 : index
    %168 = vector.load %arg22[%c2_112, %c0_113, %c0_114] : memref<4x32x32xbf16, #tpu.memory_space<vmem>>, vector<1x32x32xbf16>
    %169 = vector.shape_cast %168 : vector<1x32x32xbf16> to vector<32x32xbf16>
    %170 = arith.truncf %167 : vector<2x32xf32> to vector<2x32xbf16>
    %cst_115 = arith.constant dense<0.000000e+00> : vector<2x32xf32>
    %171 = tpu.matmul %170, %169, %cst_115 {dimension_numbers = #tpu.dot_dimension_numbers<[1], [0], [0], [1], [0, 0, 1, 1], [], []>} : vector<2x32xbf16>, vector<32x32xbf16>, vector<2x32xf32> -> vector<2x32xf32>
    %c2_116 = arith.constant 2 : index
    %c0_117 = arith.constant 0 : index
    %c0_118 = arith.constant 0 : index
    %172 = vector.load %arg23[%c2_116, %c0_117, %c0_118] : memref<4x1x32xf32, #tpu.memory_space<vmem>>, vector<1x1x32xf32>
    %173 = vector.shape_cast %172 : vector<1x1x32xf32> to vector<1x32xf32>
    %174 = vector.broadcast %173 : vector<1x32xf32> to vector<2x32xf32>
    %175 = arith.addf %171, %174 : vector<2x32xf32>
    %cst_119 = arith.constant 0.000000e+00 : f32
    %176 = vector.broadcast %cst_119 : f32 to vector<2x32xf32>
    %177 = arith.maximumf %175, %176 : vector<2x32xf32>
    %178 = arith.addf %177, %167 : vector<2x32xf32>
    %c2_120 = arith.constant 2 : index
    %c0_121 = arith.constant 0 : index
    %c0_122 = arith.constant 0 : index
    %179 = vector.load %arg24[%c2_120, %c0_121, %c0_122] : memref<4x32x32xbf16, #tpu.memory_space<vmem>>, vector<1x32x32xbf16>
    %180 = vector.shape_cast %179 : vector<1x32x32xbf16> to vector<32x32xbf16>
    %181 = arith.truncf %178 : vector<2x32xf32> to vector<2x32xbf16>
    %cst_123 = arith.constant dense<0.000000e+00> : vector<2x32xf32>
    %182 = tpu.matmul %181, %180, %cst_123 {dimension_numbers = #tpu.dot_dimension_numbers<[1], [0], [0], [1], [0, 0, 1, 1], [], []>} : vector<2x32xbf16>, vector<32x32xbf16>, vector<2x32xf32> -> vector<2x32xf32>
    %c2_124 = arith.constant 2 : index
    %c0_125 = arith.constant 0 : index
    %c0_126 = arith.constant 0 : index
    %183 = vector.load %arg25[%c2_124, %c0_125, %c0_126] : memref<4x1x32xf32, #tpu.memory_space<vmem>>, vector<1x1x32xf32>
    %184 = vector.shape_cast %183 : vector<1x1x32xf32> to vector<1x32xf32>
    %185 = vector.broadcast %184 : vector<1x32xf32> to vector<2x32xf32>
    %186 = arith.addf %182, %185 : vector<2x32xf32>
    %187 = vector.extract_strided_slice %186 {offsets = [0, 0], sizes = [2, 16], strides = [1, 1]} : vector<2x32xf32> to vector<2x16xf32>
    %188 = vector.extract_strided_slice %186 {offsets = [0, 16], sizes = [2, 16], strides = [1, 1]} : vector<2x32xf32> to vector<2x16xf32>
    %189 = math.tanh %188 : vector<2x16xf32>
    %c2_127 = arith.constant 2 : index
    %c0_128 = arith.constant 0 : index
    %c0_129 = arith.constant 0 : index
    %190 = vector.load %arg19[%c2_127, %c0_128, %c0_129] : memref<4x32x16xf32, #tpu.memory_space<vmem>>, vector<1x32x16xf32>
    %191 = vector.shape_cast %190 : vector<1x32x16xf32> to vector<32x16xf32>
    %cst_130 = arith.constant dense<0.000000e+00> : vector<2x16xf32>
    %192 = tpu.matmul %159, %191, %cst_130 {dimension_numbers = #tpu.dot_dimension_numbers<[1], [0], [0], [1], [0, 0, 1, 1], [], []>} : vector<2x32xf32>, vector<32x16xf32>, vector<2x16xf32> -> vector<2x16xf32>
    %193 = math.exp %189 : vector<2x16xf32>
    %194 = arith.mulf %192, %193 : vector<2x16xf32>
    %195 = arith.addf %194, %187 : vector<2x16xf32>
    %cst_131 = arith.constant dense<0.000000e+00> : vector<2xf32>
    %196 = vector.multi_reduction <add>, %189, %cst_131 [1] : vector<2x16xf32> to vector<2xf32>
    %197 = vector.shape_cast %196 : vector<2xf32> to vector<2x1xf32>
    %198 = arith.subf %151, %197 : vector<2x1xf32>
    %c2_132 = arith.constant 2 : index
    %c0_133 = arith.constant 0 : index
    %c0_134 = arith.constant 0 : index
    %199 = vector.load %arg21[%c2_132, %c0_133, %c0_134] : memref<4x1x32xf32, #tpu.memory_space<vmem>>, vector<1x1x32xf32>
    %200 = vector.shape_cast %199 : vector<1x1x32xf32> to vector<1x32xf32>
    %201 = vector.broadcast %200 : vector<1x32xf32> to vector<2x32xf32>
    %202 = arith.mulf %159, %201 : vector<2x32xf32>
    %c2_135 = arith.constant 2 : index
    %c0_136 = arith.constant 0 : index
    %c0_137 = arith.constant 0 : index
    %203 = vector.load %arg20[%c2_135, %c0_136, %c0_137] : memref<4x16x32xf32, #tpu.memory_space<vmem>>, vector<1x16x32xf32>
    %204 = vector.shape_cast %203 : vector<1x16x32xf32> to vector<16x32xf32>
    %cst_138 = arith.constant dense<0.000000e+00> : vector<2x32xf32>
    %205 = tpu.matmul %195, %204, %cst_138 {dimension_numbers = #tpu.dot_dimension_numbers<[1], [0], [0], [1], [0, 0, 1, 1], [], []>} : vector<2x16xf32>, vector<16x32xf32>, vector<2x32xf32> -> vector<2x32xf32>
    %206 = arith.addf %202, %205 : vector<2x32xf32>
    %c3 = arith.constant 3 : index
    %c0_139 = arith.constant 0 : index
    %c0_140 = arith.constant 0 : index
    %207 = vector.load %arg18[%c3, %c0_139, %c0_140] : memref<4x32x32xbf16, #tpu.memory_space<vmem>>, vector<1x32x32xbf16>
    %208 = vector.shape_cast %207 : vector<1x32x32xbf16> to vector<32x32xbf16>
    %209 = arith.truncf %206 : vector<2x32xf32> to vector<2x32xbf16>
    %cst_141 = arith.constant dense<0.000000e+00> : vector<2x32xf32>
    %210 = tpu.matmul %209, %208, %cst_141 {dimension_numbers = #tpu.dot_dimension_numbers<[1], [0], [0], [1], [0, 0, 1, 1], [], []>} : vector<2x32xbf16>, vector<32x32xbf16>, vector<2x32xf32> -> vector<2x32xf32>
    %211 = vector.extract_strided_slice %39 {offsets = [0, 96], sizes = [2, 32], strides = [1, 1]} : vector<2x128xf32> to vector<2x32xf32>
    %212 = arith.addf %210, %211 : vector<2x32xf32>
    %cst_142 = arith.constant 0.000000e+00 : f32
    %213 = vector.broadcast %cst_142 : f32 to vector<2x32xf32>
    %214 = arith.maximumf %212, %213 : vector<2x32xf32>
    %c3_143 = arith.constant 3 : index
    %c0_144 = arith.constant 0 : index
    %c0_145 = arith.constant 0 : index
    %215 = vector.load %arg22[%c3_143, %c0_144, %c0_145] : memref<4x32x32xbf16, #tpu.memory_space<vmem>>, vector<1x32x32xbf16>
    %216 = vector.shape_cast %215 : vector<1x32x32xbf16> to vector<32x32xbf16>
    %217 = arith.truncf %214 : vector<2x32xf32> to vector<2x32xbf16>
    %cst_146 = arith.constant dense<0.000000e+00> : vector<2x32xf32>
    %218 = tpu.matmul %217, %216, %cst_146 {dimension_numbers = #tpu.dot_dimension_numbers<[1], [0], [0], [1], [0, 0, 1, 1], [], []>} : vector<2x32xbf16>, vector<32x32xbf16>, vector<2x32xf32> -> vector<2x32xf32>
    %c3_147 = arith.constant 3 : index
    %c0_148 = arith.constant 0 : index
    %c0_149 = arith.constant 0 : index
    %219 = vector.load %arg23[%c3_147, %c0_148, %c0_149] : memref<4x1x32xf32, #tpu.memory_space<vmem>>, vector<1x1x32xf32>
    %220 = vector.shape_cast %219 : vector<1x1x32xf32> to vector<1x32xf32>
    %221 = vector.broadcast %220 : vector<1x32xf32> to vector<2x32xf32>
    %222 = arith.addf %218, %221 : vector<2x32xf32>
    %cst_150 = arith.constant 0.000000e+00 : f32
    %223 = vector.broadcast %cst_150 : f32 to vector<2x32xf32>
    %224 = arith.maximumf %222, %223 : vector<2x32xf32>
    %225 = arith.addf %224, %214 : vector<2x32xf32>
    %c3_151 = arith.constant 3 : index
    %c0_152 = arith.constant 0 : index
    %c0_153 = arith.constant 0 : index
    %226 = vector.load %arg24[%c3_151, %c0_152, %c0_153] : memref<4x32x32xbf16, #tpu.memory_space<vmem>>, vector<1x32x32xbf16>
    %227 = vector.shape_cast %226 : vector<1x32x32xbf16> to vector<32x32xbf16>
    %228 = arith.truncf %225 : vector<2x32xf32> to vector<2x32xbf16>
    %cst_154 = arith.constant dense<0.000000e+00> : vector<2x32xf32>
    %229 = tpu.matmul %228, %227, %cst_154 {dimension_numbers = #tpu.dot_dimension_numbers<[1], [0], [0], [1], [0, 0, 1, 1], [], []>} : vector<2x32xbf16>, vector<32x32xbf16>, vector<2x32xf32> -> vector<2x32xf32>
    %c3_155 = arith.constant 3 : index
    %c0_156 = arith.constant 0 : index
    %c0_157 = arith.constant 0 : index
    %230 = vector.load %arg25[%c3_155, %c0_156, %c0_157] : memref<4x1x32xf32, #tpu.memory_space<vmem>>, vector<1x1x32xf32>
    %231 = vector.shape_cast %230 : vector<1x1x32xf32> to vector<1x32xf32>
    %232 = vector.broadcast %231 : vector<1x32xf32> to vector<2x32xf32>
    %233 = arith.addf %229, %232 : vector<2x32xf32>
    %234 = vector.extract_strided_slice %233 {offsets = [0, 0], sizes = [2, 16], strides = [1, 1]} : vector<2x32xf32> to vector<2x16xf32>
    %235 = vector.extract_strided_slice %233 {offsets = [0, 16], sizes = [2, 16], strides = [1, 1]} : vector<2x32xf32> to vector<2x16xf32>
    %236 = math.tanh %235 : vector<2x16xf32>
    %c3_158 = arith.constant 3 : index
    %c0_159 = arith.constant 0 : index
    %c0_160 = arith.constant 0 : index
    %237 = vector.load %arg19[%c3_158, %c0_159, %c0_160] : memref<4x32x16xf32, #tpu.memory_space<vmem>>, vector<1x32x16xf32>
    %238 = vector.shape_cast %237 : vector<1x32x16xf32> to vector<32x16xf32>
    %cst_161 = arith.constant dense<0.000000e+00> : vector<2x16xf32>
    %239 = tpu.matmul %206, %238, %cst_161 {dimension_numbers = #tpu.dot_dimension_numbers<[1], [0], [0], [1], [0, 0, 1, 1], [], []>} : vector<2x32xf32>, vector<32x16xf32>, vector<2x16xf32> -> vector<2x16xf32>
    %240 = math.exp %236 : vector<2x16xf32>
    %241 = arith.mulf %239, %240 : vector<2x16xf32>
    %242 = arith.addf %241, %234 : vector<2x16xf32>
    %cst_162 = arith.constant dense<0.000000e+00> : vector<2xf32>
    %243 = vector.multi_reduction <add>, %236, %cst_162 [1] : vector<2x16xf32> to vector<2xf32>
    %244 = vector.shape_cast %243 : vector<2xf32> to vector<2x1xf32>
    %245 = arith.subf %198, %244 : vector<2x1xf32>
    %c3_163 = arith.constant 3 : index
    %c0_164 = arith.constant 0 : index
    %c0_165 = arith.constant 0 : index
    %246 = vector.load %arg21[%c3_163, %c0_164, %c0_165] : memref<4x1x32xf32, #tpu.memory_space<vmem>>, vector<1x1x32xf32>
    %247 = vector.shape_cast %246 : vector<1x1x32xf32> to vector<1x32xf32>
    %248 = vector.broadcast %247 : vector<1x32xf32> to vector<2x32xf32>
    %249 = arith.mulf %206, %248 : vector<2x32xf32>
    %c3_166 = arith.constant 3 : index
    %c0_167 = arith.constant 0 : index
    %c0_168 = arith.constant 0 : index
    %250 = vector.load %arg20[%c3_166, %c0_167, %c0_168] : memref<4x16x32xf32, #tpu.memory_space<vmem>>, vector<1x16x32xf32>
    %251 = vector.shape_cast %250 : vector<1x16x32xf32> to vector<16x32xf32>
    %cst_169 = arith.constant dense<0.000000e+00> : vector<2x32xf32>
    %252 = tpu.matmul %242, %251, %cst_169 {dimension_numbers = #tpu.dot_dimension_numbers<[1], [0], [0], [1], [0, 0, 1, 1], [], []>} : vector<2x16xf32>, vector<16x32xf32>, vector<2x32xf32> -> vector<2x32xf32>
    %253 = arith.addf %249, %252 : vector<2x32xf32>
    %c0_170 = arith.constant 0 : index
    %c0_171 = arith.constant 0 : index
    %254 = vector.load %arg26[%c0_170, %c0_171] : memref<32x128xf32, #tpu.memory_space<vmem>>, vector<32x128xf32>
    %cst_172 = arith.constant dense<0.000000e+00> : vector<2x128xf32>
    %255 = tpu.matmul %253, %254, %cst_172 {dimension_numbers = #tpu.dot_dimension_numbers<[1], [0], [0], [1], [0, 0, 1, 1], [], []>} : vector<2x32xf32>, vector<32x128xf32>, vector<2x128xf32> -> vector<2x128xf32>
    %c0_173 = arith.constant 0 : index
    %c0_174 = arith.constant 0 : index
    %256 = vector.load %arg4[%c0_173, %c0_174] : memref<2x128xf32, #tpu.memory_space<vmem>>, vector<2x128xf32>
    %257 = arith.addf %255, %256 : vector<2x128xf32>
    %258 = tpu.iota {dimensions = array<i32: 1>} : vector<1x128xi32>
    %c32_i32 = arith.constant 32 : i32
    %259 = vector.broadcast %c32_i32 : i32 to vector<1x128xi32>
    %260 = arith.cmpi eq, %258, %259 : vector<1x128xi32>
    %261 = arith.extui %260 : vector<1x128xi1> to vector<1x128xi32>
    %262 = arith.sitofp %261 : vector<1x128xi32> to vector<1x128xf32>
    %263 = arith.addf %64, %245 : vector<2x1xf32>
    %264 = vector.broadcast %263 : vector<2x1xf32> to vector<2x128xf32>
    %265 = vector.broadcast %262 : vector<1x128xf32> to vector<2x128xf32>
    %266 = arith.mulf %264, %265 : vector<2x128xf32>
    %267 = arith.addf %257, %266 : vector<2x128xf32>
    %c0_175 = arith.constant 0 : index
    %c0_176 = arith.constant 0 : index
    %268 = vector.load %arg27[%c0_175, %c0_176] : memref<2x128xf32, #tpu.memory_space<vmem>>, vector<2x128xf32>
    tpu.vector_store %arg27[%c0_175, %c0_176], %267 {strides = array<i32>} : memref<2x128xf32, #tpu.memory_space<vmem>>, vector<2x128xf32>,
    return
  }
  func.func @transform_0(%arg0: i32) -> (i32, i32) {
    %c0_i32 = arith.constant 0 : i32
    %c0_i32_0 = arith.constant 0 : i32
    return %arg0, %c0_i32 : i32, i32
  }
  func.func @transform_1(%arg0: i32) -> (i32, i32) {
    %c0_i32 = arith.constant 0 : i32
    %c0_i32_0 = arith.constant 0 : i32
    return %arg0, %c0_i32 : i32, i32
  }
  func.func @transform_2(%arg0: i32) -> (i32, i32) {
    %c0_i32 = arith.constant 0 : i32
    %c0_i32_0 = arith.constant 0 : i32
    return %arg0, %c0_i32 : i32, i32
  }
  func.func @transform_3(%arg0: i32) -> (i32, i32) {
    %c0_i32 = arith.constant 0 : i32
    %c0_i32_0 = arith.constant 0 : i32
    return %arg0, %c0_i32 : i32, i32
  }
  func.func @transform_4(%arg0: i32) -> (i32, i32) {
    %c0_i32 = arith.constant 0 : i32
    %c0_i32_0 = arith.constant 0 : i32
    %c0_i32_1 = arith.constant 0 : i32
    return %c0_i32, %c0_i32_0 : i32, i32
  }
  func.func @transform_5(%arg0: i32) -> (i32, i32) {
    %c0_i32 = arith.constant 0 : i32
    %c0_i32_0 = arith.constant 0 : i32
    %c0_i32_1 = arith.constant 0 : i32
    return %c0_i32, %c0_i32_0 : i32, i32
  }
  func.func @transform_6(%arg0: i32) -> (i32, i32) {
    %c0_i32 = arith.constant 0 : i32
    %c0_i32_0 = arith.constant 0 : i32
    %c0_i32_1 = arith.constant 0 : i32
    return %c0_i32, %c0_i32_0 : i32, i32
  }
  func.func @transform_7(%arg0: i32) -> (i32, i32) {
    %c0_i32 = arith.constant 0 : i32
    %c0_i32_0 = arith.constant 0 : i32
    %c0_i32_1 = arith.constant 0 : i32
    return %c0_i32, %c0_i32_0 : i32, i32
  }
  func.func @transform_8(%arg0: i32) -> (i32, i32) {
    %c0_i32 = arith.constant 0 : i32
    %c0_i32_0 = arith.constant 0 : i32
    %c0_i32_1 = arith.constant 0 : i32
    return %c0_i32, %c0_i32_0 : i32, i32
  }
  func.func @transform_9(%arg0: i32) -> (i32, i32) {
    %c0_i32 = arith.constant 0 : i32
    %c0_i32_0 = arith.constant 0 : i32
    %c0_i32_1 = arith.constant 0 : i32
    return %c0_i32, %c0_i32_0 : i32, i32
  }
  func.func @transform_10(%arg0: i32) -> (i32, i32) {
    %c0_i32 = arith.constant 0 : i32
    %c0_i32_0 = arith.constant 0 : i32
    %c0_i32_1 = arith.constant 0 : i32
    return %c0_i32, %c0_i32_0 : i32, i32
  }
  func.func @transform_11(%arg0: i32) -> (i32, i32) {
    %c0_i32 = arith.constant 0 : i32
    %c0_i32_0 = arith.constant 0 : i32
    %c0_i32_1 = arith.constant 0 : i32
    return %c0_i32, %c0_i32_0 : i32, i32
  }
  func.func @transform_12(%arg0: i32) -> (i32, i32) {
    %c0_i32 = arith.constant 0 : i32
    %c0_i32_0 = arith.constant 0 : i32
    %c0_i32_1 = arith.constant 0 : i32
    return %c0_i32, %c0_i32_0 : i32, i32
  }
  func.func @transform_13(%arg0: i32) -> (i32, i32) {
    %c0_i32 = arith.constant 0 : i32
    %c0_i32_0 = arith.constant 0 : i32
    %c0_i32_1 = arith.constant 0 : i32
    return %c0_i32, %c0_i32_0 : i32, i32
  }
  func.func @transform_14(%arg0: i32) -> (i32, i32) {
    %c0_i32 = arith.constant 0 : i32
    %c0_i32_0 = arith.constant 0 : i32
    %c0_i32_1 = arith.constant 0 : i32
    return %c0_i32, %c0_i32_0 : i32, i32
  }
  func.func @transform_15(%arg0: i32) -> (i32, i32) {
    %c0_i32 = arith.constant 0 : i32
    %c0_i32_0 = arith.constant 0 : i32
    %c0_i32_1 = arith.constant 0 : i32
    return %c0_i32, %c0_i32_0 : i32, i32
  }
  func.func @transform_16(%arg0: i32) -> (i32, i32) {
    %c0_i32 = arith.constant 0 : i32
    %c0_i32_0 = arith.constant 0 : i32
    %c0_i32_1 = arith.constant 0 : i32
    return %c0_i32, %c0_i32_0 : i32, i32
  }
  func.func @transform_17(%arg0: i32) -> (i32, i32, i32) {
    %c0_i32 = arith.constant 0 : i32
    %c0_i32_0 = arith.constant 0 : i32
    %c0_i32_1 = arith.constant 0 : i32
    %c0_i32_2 = arith.constant 0 : i32
    return %c0_i32, %c0_i32_0, %c0_i32_1 : i32, i32, i32
  }
  func.func @transform_18(%arg0: i32) -> (i32, i32, i32) {
    %c0_i32 = arith.constant 0 : i32
    %c0_i32_0 = arith.constant 0 : i32
    %c0_i32_1 = arith.constant 0 : i32
    %c0_i32_2 = arith.constant 0 : i32
    return %c0_i32, %c0_i32_0, %c0_i32_1 : i32, i32, i32
  }
  func.func @transform_19(%arg0: i32) -> (i32, i32, i32) {
    %c0_i32 = arith.constant 0 : i32
    %c0_i32_0 = arith.constant 0 : i32
    %c0_i32_1 = arith.constant 0 : i32
    %c0_i32_2 = arith.constant 0 : i32
    return %c0_i32, %c0_i32_0, %c0_i32_1 : i32, i32, i32
  }
  func.func @transform_20(%arg0: i32) -> (i32, i32, i32) {
    %c0_i32 = arith.constant 0 : i32
    %c0_i32_0 = arith.constant 0 : i32
    %c0_i32_1 = arith.constant 0 : i32
    %c0_i32_2 = arith.constant 0 : i32
    return %c0_i32, %c0_i32_0, %c0_i32_1 : i32, i32, i32
  }
  func.func @transform_21(%arg0: i32) -> (i32, i32, i32) {
    %c0_i32 = arith.constant 0 : i32
    %c0_i32_0 = arith.constant 0 : i32
    %c0_i32_1 = arith.constant 0 : i32
    %c0_i32_2 = arith.constant 0 : i32
    return %c0_i32, %c0_i32_0, %c0_i32_1 : i32, i32, i32
  }
  func.func @transform_22(%arg0: i32) -> (i32, i32, i32) {
    %c0_i32 = arith.constant 0 : i32
    %c0_i32_0 = arith.constant 0 : i32
    %c0_i32_1 = arith.constant 0 : i32
    %c0_i32_2 = arith.constant 0 : i32
    return %c0_i32, %c0_i32_0, %c0_i32_1 : i32, i32, i32
  }
  func.func @transform_23(%arg0: i32) -> (i32, i32, i32) {
    %c0_i32 = arith.constant 0 : i32
    %c0_i32_0 = arith.constant 0 : i32
    %c0_i32_1 = arith.constant 0 : i32
    %c0_i32_2 = arith.constant 0 : i32
    return %c0_i32, %c0_i32_0, %c0_i32_1 : i32, i32, i32
  }
  func.func @transform_24(%arg0: i32) -> (i32, i32, i32) {
    %c0_i32 = arith.constant 0 : i32
    %c0_i32_0 = arith.constant 0 : i32
    %c0_i32_1 = arith.constant 0 : i32
    %c0_i32_2 = arith.constant 0 : i32
    return %c0_i32, %c0_i32_0, %c0_i32_1 : i32, i32, i32
  }
  func.func @transform_25(%arg0: i32) -> (i32, i32) {
    %c0_i32 = arith.constant 0 : i32
    %c0_i32_0 = arith.constant 0 : i32
    %c0_i32_1 = arith.constant 0 : i32
    return %c0_i32, %c0_i32_0 : i32, i32
  }
  func.func @transform_26(%arg0: i32) -> (i32, i32) {
    %c0_i32 = arith.constant 0 : i32
    %c0_i32_0 = arith.constant 0 : i32
    return %arg0, %c0_i32 : i32, i32
  }
}

</mosaic_0001>

<bundles_post_ra>
// kernel: tile.9
= control target key start
LH: loop header
LB: loop body
LE: loop exit
PB: predicated region body
PF: predicated region fallthrough
CT: control target
= control target key end

     0   :  { %s7_s6 = smov 3  ;;  %s21_s9 = smov 3  ;;  %vm4_vm0 = vcmask 31744   ;;  %vm11_vm1 = vcmask 261344   ;;  %vm18_vm2 = vcmask 228544   ;;  %vm25_vm3 = vcmask 195744   ;;  %s119_s0 = inlined_call_operand.vmem [shape: f32[2,8,4], index: 0, kind: input, shape index: {}]   ;;  %s120_s1 = inlined_call_operand.vmem [shape: f32[2,32], index: 1, kind: output, shape index: {}]  }
   0x1   :  { %v61_v0 = vld [vmem:[%s119_s0 + $0x7] ss:$8 sm:%s7_s6]   ;;  %s75_s10 = smov 28   ;;  %v63_v1 = vld [vmem:[%s119_s0 + $0x5] ss:$8 sm:%s21_s9]   ;;  %s14_s13 = smov 3 }
   0x2   :  { %9 = vrot.lane.b32.xlu0 %v61_v0, %s75_s10  ;;  %s76_s14 = smov 20   ;;  %v62_v2 = vld [vmem:[%s119_s0 + $0x6] ss:$8 sm:%s14_s13]   ;;  %s28_s17 = smov 3  ;;  %vm32_vm4 = vcmask 162944   ;;  %vm39_vm5 = vcmask 130144  }
   0x3   :  { %23 = vrot.lane.b32.xlu1 %v63_v1, %s76_s14  ;;  %v64_v3 = vld [vmem:[%s119_s0 + $0x4] ss:$8 sm:%s28_s17]   ;;  %s35_s20 = smov 3  ;;  %s42_s21 = smov 3  ;;  %vm46_vm6 = vcmask 97344   ;;  %vm53_vm7 = vcmask 64544  }
   0x4   :  { %s77_s22 = smov 24   ;;  %s78_s23 = smov 16   ;;  %v65_v4 = vld [vmem:[%s119_s0 + $0x3] ss:$8 sm:%s35_s20]   ;;  %v66_v5 = vld [vmem:[%s119_s0 + $0x2] ss:$8 sm:%s42_s21]  }
   0x5   :  { %s2_s26 = smov 3  ;;  %s49_s29 = smov 3 }
   0x6   :  { %16 = vrot.lane.b32.xlu0 %v62_v2, %s77_s22  ;;  %v3_v6 = vld [vmem:[%s119_s0] ss:$8 sm:%s2_s26]   ;;  %s79_s3 = smov 12   ;;  %s80_s4 = smov 8  }
   0x7   :  { %30 = vrot.lane.b32.xlu1 %v64_v3, %s78_s23  ;;  %5 = vst.msk [vmem:[#allocation0] sm:$0x3] %vm4_vm0, %v3_v6   ;;  %v67_v7 = vld [vmem:[%s119_s0 + $0x1] ss:$8 sm:%s49_s29]   ;;  %s81_s0 = smov 4  }
   0xa   :  { %37 = vrot.lane.b32.xlu0 %v65_v4, %s79_s3 }
   0xb   :  { %44 = vrot.lane.b32.xlu1 %v66_v5, %s80_s4 }
   0xe   :  { %51 = vrot.lane.b32.xlu0 %v67_v7, %s81_s0 }
  0x74   :  { %v10_v8 = vpop.permute.xlu0 %9  }
  0x75   :  { %12 = vst.msk [vmem:[#allocation0] sm:$0x3] %vm11_vm1, %v10_v8   ;;  %v24_v9 = vpop.permute.xlu1 %23  }
  0x78   :  { %v17_v10 = vpop.permute.xlu0 %16  }
  0x79   :  { %19 = vst.msk [vmem:[#allocation0] sm:$0x3] %vm18_vm2, %v17_v10   ;;  %v31_v11 = vpop.permute.xlu1 %30  }
  0x7a   :  { %26 = vst.msk [vmem:[#allocation0] sm:$0x3] %vm25_vm3, %v24_v9  }
  0x7b   :  { %33 = vst.msk [vmem:[#allocation0] sm:$0x3] %vm32_vm4, %v31_v11  }
  0x7c   :  { %v38_v12 = vpop.permute.xlu0 %37  }
  0x7d   :  { %40 = vst.msk [vmem:[#allocation0] sm:$0x3] %vm39_vm5, %v38_v12   ;;  %v45_v13 = vpop.permute.xlu1 %44  }
  0x7e   :  { %47 = vst.msk [vmem:[#allocation0] sm:$0x3] %vm46_vm6, %v45_v13  }
  0x80   :  { %v52_v14 = vpop.permute.xlu0 %51  }
  0x81   :  { %54 = vst.msk [vmem:[#allocation0] sm:$0x3] %vm53_vm7, %v52_v14  }
  0x88   :  { %v58_v15 = vld [vmem:[#allocation0] sm:$0x3] }
  0x89   :  { %60 = vst [vmem:[%s120_s1] sm:$0x3] %v58_v15 }

// kernel: forward.1
= control target key start
LH: loop header
LB: loop body
LE: loop exit
PB: predicated region body
PF: predicated region fallthrough
CT: control target
= control target key end

     0   :  { %v232_v7 = vlaneseq  ;;  %v4372_v8 = vmov 1966171168   ;;  %vm1445_vm0 = vcmask 1041408   ;;  %vm4375_vm1 = vmmov 0   ;;  %s5495_s4 = inlined_call_operand.vmem [shape: bf16[1152,256], index: 4, kind: input, shape index: {}]   ;;  %s5496_s0 = inlined_call_operand.vmem [shape: bf16[2,1152], index: 0, kind: input, shape index: {}]   ;;  %s5497_s6 = inlined_call_operand.vmem [shape: bf16[256,16], index: 6, kind: input, shape index: {}]   ;;  %s5498_s8 = inlined_call_operand.vmem [shape: bf16[20,32], index: 8, kind: input, shape index: {}]   ;;  %s5499_s5 = inlined_call_operand.vmem [shape: f32[1,256], index: 5, kind: input, shape index: {}]   ;;  %s5500_s1 = inlined_call_operand.vmem [shape: f32[2,20], index: 1, kind: input, shape index: {}]   ;;  %s5501_s10 = inlined_call_operand.vmem [shape: bf16[32,16], index: 10, kind: input, shape index: {}]   ;;  %s5502_s13 = inlined_call_operand.vmem [shape: bf16[16,160], index: 13, kind: input, shape index: {}]   ;;  %s5503_s12 = inlined_call_operand.vmem [shape: bf16[16,160], index: 12, kind: input, shape index: {}]   ;;  %s5504_s9 = inlined_call_operand.vmem [shape: f32[1,32], index: 9, kind: input, shape index: {}]   ;;  %s5505_s7 = inlined_call_operand.vmem [shape: f32[1,16], index: 7, kind: input, shape index: {}]   ;;  %s5506_s11 = inlined_call_operand.vmem [shape: f32[1,16], index: 11, kind: input, shape index: {}]   ;;  %s5507_s15 = inlined_call_operand.vmem [shape: bf16[32,64], index: 15, kind: input, shape index: {}]   ;;  %s5508_s2 = inlined_call_operand.vmem [shape: f32[2,32], index: 2, kind: input, shape index: {}]   ;;  %s5509_s14 = inlined_call_operand.vmem [shape: f32[1,160], index: 14, kind: input, shape index: {}]   ;;  %s5510_s17 = inlined_call_operand.vmem [shape: bf16[4,32,32], index: 17, kind: input, shape index: {}]   ;;  %s5511_s16 = inlined_call_operand.vmem [shape: f32[1,64], index: 16, kind: input, shape index: {}]   ;;  %s5512_s21 = inlined_call_operand.vmem [shape: bf16[4,32,32], index: 21, kind: input, shape index: {}]   ;;  %s5513_s23 = inlined_call_operand.vmem [shape: bf16[4,32,32], index: 23, kind: input, shape index: {}]   ;;  %s5514_s22 = inlined_call_operand.vmem [shape: f32[4,1,32], index: 22, kind: input, shape index: {}]   ;;  %s5515_s18 = inlined_call_operand.vmem [shape: f32[4,32,16], index: 18, kind: input, shape index: {}]   ;;  %s5516_s24 = inlined_call_operand.vmem [shape: f32[4,1,32], index: 24, kind: input, shape index: {}]   ;;  %s5517_s19 = inlined_call_operand.vmem [shape: f32[4,16,32], index: 19, kind: input, shape index: {}]   ;;  %s5518_s20 = inlined_call_operand.vmem [shape: f32[4,1,32], index: 20, kind: input, shape index: {}]   ;;  %s5519_s25 = inlined_call_operand.vmem [shape: f32[32,128], index: 25, kind: input, shape index: {}]   ;;  %s5520_s3 = inlined_call_operand.vmem [shape: f32[2,128], index: 3, kind: input, shape index: {}]   ;;  %s5521_s26 = inlined_call_operand.vmem [shape: f32[2,128], index: 26, kind: output, shape index: {}]  }
   0x1   :  { %5529 = sst [smem:[#allocation2_spill]] %s5495_s4  ;;  %v246_v9 = vunpack.c.l.s4 %v4372_v8  ;;  %vm1441_vm2 = vcmask 162816   ;;  %vm1514_vm3 = vcmask 261120   ;;  %vm1574_vm4 = vcmask 130048  }
   0x2   :  { %5530 = sst [smem:[#allocation3_spill]] %s5496_s0  ;;  %v4544_v12 = vshrl.u32 %v232_v7, 7  ;;  %vm1769_vm5 = vcmask 254976   ;;  %vm2070_vm6 = vcmask 123904  }
   0x3   :  { %5531 = sst [smem:[#allocation4_spill]] %s5497_s6  ;;  %v247_v13 = vunpack.c.0.s8 %v246_v9  ;;  %s5541_s27 = sld [smem:[#allocation3_spill]] }
   0x4   :  { %5532 = sst [smem:[#allocation5_spill]] %s5498_s8  ;;  %s5542_s29 = sld [smem:[#allocation4_spill]] }
   0x5   :  { %5533 = sst [smem:[#allocation6_spill]] %s5499_s5  ;;  %v4553_v16 = vsub.s32 %v247_v13, %v4544_v12  ;;  %s5544_s0 = sld [smem:[#allocation5_spill]] }
   0x6   :  { %5534 = sst [smem:[#allocation7_spill]] %s5500_s1  ;;  %s4376_s5 = smov 32  }
   0x7   :  { %5535 = sst [smem:[#allocation8_spill]] %s5501_s10  ;;  %s5543_s10 = sld [smem:[#allocation6_spill]] }
   0x8   :  { %5536 = sst [smem:[#allocation9_spill]] %s5502_s13  ;;  %s5540_s13 = sld [smem:[#allocation2_spill]] }
   0x9   :  { %5537 = sst [smem:[#allocation10_spill]] %s5503_s12  ;;  %v4564_v19 = vld [vmem:[%s5541_s27] sm:$0xff]  ;;  %s5545_s1 = sld [smem:[#allocation7_spill]] }
   0xa   :  { %5538 = sst [smem:[#allocation11_spill]] %s5504_s9  ;;  %v251_v20 = vrot.slane %v4564_v19, %v4553_v16  ;;  %s5546_s30 = sld [smem:[#allocation8_spill]] }
   0xb   :  { %5539 = sst [smem:[#allocation12_spill]] %s5505_s7  ;;  %s5548_s8 = sld [smem:[#allocation11_spill]] }
   0xc   :  { %v259_v23 = vcombine.high %v251_v20, %v251_v20  ;;  %v4630_v43 = vrot.slane %v251_v20, %v4553_v16  ;;  %s5550_s4 = sld [smem:[#allocation12_spill]] }
   0xe   :  { %v4085_v0 = vld [vmem:[%s5540_s13 + $0x4] ss:$8 sps:$4 sm:$0xff]   ;;  %v4087_v1 = vld [vmem:[%s5540_s13] ss:$8 sps:$4 sm:$0xff]   ;;  %v4088_v2 = vld [vmem:[%s5540_s13 + $0x14] ss:$8 sps:$4 sm:$0xff]   ;;  %v281_v24 = vrot.slane %v259_v23, %v4553_v16 }
   0xf   :  { %1036 = vmatprep.subr.bf16.mxu0 %v4085_v0  ;;  %v4090_v3 = vld [vmem:[%s5540_s13 + $0x10] ss:$8 sps:$4 sm:$0xff]   ;;  %v4091_v4 = vld [vmem:[%s5540_s13 + $0x24] ss:$8 sps:$4 sm:$0xff]   ;;  %v4093_v5 = vld [vmem:[%s5540_s13 + $0x20] ss:$8 sps:$4 sm:$0xff]  }
  0x10   :  { %1037 = vmatpush1.bf16.msra.mxu0 %v4087_v1  ;;  %v4094_v6 = vld [vmem:[%s5540_s13 + $0x34] ss:$8 sps:$4 sm:$0xff]   ;;  %v4096_v10 = vld [vmem:[%s5540_s13 + $0x30] ss:$8 sps:$4 sm:$0xff]   ;;  %v4097_v11 = vld [vmem:[%s5540_s13 + $0x44] ss:$8 sps:$4 sm:$0xff]   ;;  %1068 = vmatprep.mubr.bf16.mxu0 %v281_v24  ;;  %v291_v44 = vcombine.high %v281_v24, %v281_v24 }
  0x11   :  { %1038 = vmatprep.subr.bf16.mxu0 %v4088_v2  ;;  %v4099_v14 = vld [vmem:[%s5540_s13 + $0x40] ss:$8 sps:$4 sm:$0xff]   ;;  %v4100_v15 = vld [vmem:[%s5540_s13 + $0x54] ss:$8 sps:$4 sm:$0xff]   ;;  %v4102_v17 = vld [vmem:[%s5540_s13 + $0x50] ss:$8 sps:$4 sm:$0xff]  }
  0x12   :  { %v4103_v18 = vld [vmem:[%s5540_s13 + $0x64] ss:$8 sps:$4 sm:$0xff]   ;;  %v4105_v21 = vld [vmem:[%s5540_s13 + $0x60] ss:$8 sps:$4 sm:$0xff]   ;;  %v4106_v22 = vld [vmem:[%s5540_s13 + $0x74] ss:$8 sps:$4 sm:$0xff]  }
  0x13   :  { %v4108_v25 = vld [vmem:[%s5540_s13 + $0x70] ss:$8 sps:$4 sm:$0xff]   ;;  %v4109_v26 = vld [vmem:[%s5540_s13 + $0x84] ss:$8 sps:$4 sm:$0xff]   ;;  %v4111_v27 = vld [vmem:[%s5540_s13 + $0x80] ss:$8 sps:$4 sm:$0xff]  }
  0x14   :  { %1039 = vmatpush1.bf16.msra.mxu0 %v4090_v3  ;;  %v4112_v28 = vld [vmem:[%s5540_s13 + $0x94] ss:$8 sps:$4 sm:$0xff]   ;;  %v4114_v29 = vld [vmem:[%s5540_s13 + $0x90] ss:$8 sps:$4 sm:$0xff]   ;;  %v4115_v30 = vld [vmem:[%s5540_s13 + $0xa4] ss:$8 sps:$4 sm:$0xff]  }
  0x15   :  { %1040 = vmatprep.subr.bf16.mxu0 %v4091_v4  ;;  %v4117_v31 = vld [vmem:[%s5540_s13 + $0xa0] ss:$8 sps:$4 sm:$0xff]   ;;  %v4118_v32 = vld [vmem:[%s5540_s13 + $0xb4] ss:$8 sps:$4 sm:$0xff]   ;;  %v4120_v33 = vld [vmem:[%s5540_s13 + $0xb0] ss:$8 sps:$4 sm:$0xff]  }
  0x16   :  { %v4121_v34 = vld [vmem:[%s5540_s13 + $0xc4] ss:$8 sps:$4 sm:$0xff]   ;;  %v4123_v35 = vld [vmem:[%s5540_s13 + $0xc0] ss:$8 sps:$4 sm:$0xff]   ;;  %v4124_v36 = vld [vmem:[%s5540_s13 + $0xd4] ss:$8 sps:$4 sm:$0xff]  }
  0x17   :  { %v4126_v37 = vld [vmem:[%s5540_s13 + $0xd0] ss:$8 sps:$4 sm:$0xff]   ;;  %v4127_v38 = vld [vmem:[%s5540_s13 + $0xe4] ss:$8 sps:$4 sm:$0xff]   ;;  %v4129_v39 = vld [vmem:[%s5540_s13 + $0xe0] ss:$8 sps:$4 sm:$0xff]  }
  0x18   :  { %1041 = vmatpush1.bf16.msra.mxu0 %v4093_v5  ;;  %v4130_v40 = vld [vmem:[%s5540_s13 + $0xf4] ss:$8 sps:$4 sm:$0xff]   ;;  %v4132_v41 = vld [vmem:[%s5540_s13 + $0xf0] ss:$8 sps:$4 sm:$0xff]   ;;  %v4136_v42 = vld [vmem:[%s5540_s13 + $0x104] ss:$8 sps:$4 sm:$0xff]  }
  0x19   :  { %1042 = vmatprep.subr.bf16.mxu0 %v4094_v6  ;;  %v4134_v45 = vld [vmem:[%s5540_s13 + $0x100] ss:$8 sps:$4 sm:$0xff]   ;;  %v4139_v46 = vld [vmem:[%s5540_s13 + $0x114] ss:$8 sps:$4 sm:$0xff]   ;;  %v4137_v47 = vld [vmem:[%s5540_s13 + $0x110] ss:$8 sps:$4 sm:$0xff]  }
  0x1a   :  { %v4142_v48 = vld [vmem:[%s5540_s13 + $0x124] ss:$8 sps:$4 sm:$0xff]   ;;  %v4140_v49 = vld [vmem:[%s5540_s13 + $0x120] ss:$8 sps:$4 sm:$0xff]   ;;  %v4145_v50 = vld [vmem:[%s5540_s13 + $0x134] ss:$8 sps:$4 sm:$0xff]  }
  0x1b   :  { %v4143_v51 = vld [vmem:[%s5540_s13 + $0x130] ss:$8 sps:$4 sm:$0xff]   ;;  %v4148_v52 = vld [vmem:[%s5540_s13 + $0x144] ss:$8 sps:$4 sm:$0xff]   ;;  %v4146_v53 = vld [vmem:[%s5540_s13 + $0x140] ss:$8 sps:$4 sm:$0xff]  }
  0x1c   :  { %1043 = vmatpush1.bf16.msra.mxu0 %v4096_v10  ;;  %v4151_v54 = vld [vmem:[%s5540_s13 + $0x154] ss:$8 sps:$4 sm:$0xff]   ;;  %v4149_v55 = vld [vmem:[%s5540_s13 + $0x150] ss:$8 sps:$4 sm:$0xff]   ;;  %v4154_v56 = vld [vmem:[%s5540_s13 + $0x164] ss:$8 sps:$4 sm:$0xff]  }
  0x1d   :  { %1044 = vmatprep.subr.bf16.mxu0 %v4097_v11  ;;  %v4152_v57 = vld [vmem:[%s5540_s13 + $0x160] ss:$8 sps:$4 sm:$0xff]   ;;  %v4157_v58 = vld [vmem:[%s5540_s13 + $0x174] ss:$8 sps:$4 sm:$0xff]   ;;  %v4155_v59 = vld [vmem:[%s5540_s13 + $0x170] ss:$8 sps:$4 sm:$0xff]  }
  0x1e   :  { %v4160_v60 = vld [vmem:[%s5540_s13 + $0x184] ss:$8 sps:$4 sm:$0xff]   ;;  %v4158_v61 = vld [vmem:[%s5540_s13 + $0x180] ss:$8 sps:$4 sm:$0xff]   ;;  %v4163_v63 = vld [vmem:[%s5540_s13 + $0x194] ss:$8 sps:$4 sm:$0xff]  }
  0x1f   :  { %v4254_v62 = vld [vmem:[%s5540_s13 + $0x404] ss:$8 sps:$4 sm:$0xff]   ;;  %v4259_v0 = vld [vmem:[%s5540_s13 + $0x400] ss:$8 sps:$4 sm:$0xff]   ;;  %v4161_v1 = vld [vmem:[%s5540_s13 + $0x190] ss:$8 sps:$4 sm:$0xff]  }
  0x20   :  { %1045 = vmatpush1.bf16.msra.mxu0 %v4099_v14  ;;  %1200 = vmatprep.subr.bf16.mxu1 %v4254_v62  ;;  %v4260_v2 = vld [vmem:[%s5540_s13 + $0x414] ss:$8 sps:$4 sm:$0xff]   ;;  %v4166_v3 = vld [vmem:[%s5540_s13 + $0x1a4] ss:$8 sps:$4 sm:$0xff]   ;;  %v4265_v4 = vld [vmem:[%s5540_s13 + $0x410] ss:$8 sps:$4 sm:$0xff]  }
  0x21   :  { %1046 = vmatprep.subr.bf16.mxu0 %v4100_v15  ;;  %1201 = vmatpush1.bf16.msra.mxu1 %v4259_v0  ;;  %v4164_v5 = vld [vmem:[%s5540_s13 + $0x1a0] ss:$8 sps:$4 sm:$0xff]   ;;  %v4266_v6 = vld [vmem:[%s5540_s13 + $0x424] ss:$8 sps:$4 sm:$0xff]   ;;  %v4169_v8 = vld [vmem:[%s5540_s13 + $0x1b4] ss:$8 sps:$4 sm:$0xff]  }
  0x22   :  { %1202 = vmatprep.subr.bf16.mxu1 %v4260_v2  ;;  %v4271_v9 = vld [vmem:[%s5540_s13 + $0x420] ss:$8 sps:$4 sm:$0xff]   ;;  %v4167_v10 = vld [vmem:[%s5540_s13 + $0x1b0] ss:$8 sps:$4 sm:$0xff]   ;;  %v4272_v11 = vld [vmem:[%s5540_s13 + $0x434] ss:$8 sps:$4 sm:$0xff]  }
  0x23   :  { %v4172_v13 = vld [vmem:[%s5540_s13 + $0x1c4] ss:$8 sps:$4 sm:$0xff]   ;;  %v4277_v14 = vld [vmem:[%s5540_s13 + $0x430] ss:$8 sps:$4 sm:$0xff]   ;;  %v4170_v15 = vld [vmem:[%s5540_s13 + $0x1c0] ss:$8 sps:$4 sm:$0xff]  }
  0x24   :  { %1047 = vmatpush1.bf16.msra.mxu0 %v4102_v17  ;;  %v4278_v17 = vld [vmem:[%s5540_s13 + $0x444] ss:$8 sps:$4 sm:$0xff]   ;;  %v4283_v20 = vld [vmem:[%s5540_s13 + $0x440] ss:$8 sps:$4 sm:$0xff]   ;;  %v4284_v23 = vld [vmem:[%s5540_s13 + $0x454] ss:$8 sps:$4 sm:$0xff]  }
  0x25   :  { %1048 = vmatprep.subr.bf16.mxu0 %v4103_v18  ;;  %1203 = vmatpush1.bf16.msra.mxu1 %v4265_v4  ;;  %v4175_v18 = vld [vmem:[%s5540_s13 + $0x1d4] ss:$8 sps:$4 sm:$0xff]   ;;  %v4178_v24 = vld [vmem:[%s5540_s13 + $0x1e4] ss:$8 sps:$4 sm:$0xff]  }
  0x26   :  { %1204 = vmatprep.subr.bf16.mxu1 %v4266_v6  ;;  %v4202_v62 = vld [vmem:[%s5540_s13 + $0x264] ss:$8 sps:$4 sm:$0xff]   ;;  %v4205_v0 = vld [vmem:[%s5540_s13 + $0x274] ss:$8 sps:$4 sm:$0xff]  }
  0x27   :  { %v4208_v2 = vld [vmem:[%s5540_s13 + $0x284] ss:$8 sps:$4 sm:$0xff]   ;;  %v4211_v4 = vld [vmem:[%s5540_s13 + $0x294] ss:$8 sps:$4 sm:$0xff]  }
  0x28   :  { %1049 = vmatpush1.bf16.msra.mxu0 %v4105_v21  ;;  %v244_v21 = vcombine.high %v4564_v19, %v4564_v19  ;;  %v4176_v19 = vld [vmem:[%s5540_s13 + $0x1e0] ss:$8 sps:$4 sm:$0xff]   ;;  %v4214_v6 = vld [vmem:[%s5540_s13 + $0x2a4] ss:$8 sps:$4 sm:$0xff]  }
  0x29   :  { %1050 = vmatprep.subr.bf16.mxu0 %v4106_v22  ;;  %1205 = vmatpush1.bf16.msra.mxu1 %v4271_v9  ;;  %v4173_v22 = vld [vmem:[%s5540_s13 + $0x1d0] ss:$8 sps:$4 sm:$0xff]   ;;  %v4217_v9 = vld [vmem:[%s5540_s13 + $0x2b4] ss:$8 sps:$4 sm:$0xff]  }
  0x2a   :  { %1206 = vmatprep.subr.bf16.mxu1 %v4272_v11  ;;  %v4220_v11 = vld [vmem:[%s5540_s13 + $0x2c4] ss:$8 sps:$4 sm:$0xff]  }
  0x2c   :  { %1051 = vmatpush1.bf16.msra.mxu0 %v4108_v25  ;;  %v4289_v25 = vld [vmem:[%s5540_s13 + $0x450] ss:$8 sps:$4 sm:$0xff]  }
  0x2d   :  { %1052 = vmatprep.subr.bf16.mxu0 %v4109_v26  ;;  %1207 = vmatpush1.bf16.msra.mxu1 %v4277_v14  ;;  %v4759_v26 = vrot.slane %v244_v21, %v4553_v16  ;;  %v4223_v14 = vld [vmem:[%s5540_s13 + $0x2d4] ss:$8 sps:$4 sm:$0xff]   ;;  %v4227_v21 = vld [vmem:[%s5540_s13 + $0x2f0] ss:$8 sps:$4 sm:$0xff]  }
  0x2e   :  { %1208 = vmatprep.subr.bf16.mxu1 %v4278_v17  ;;  %v4226_v17 = vld [vmem:[%s5540_s13 + $0x2e4] ss:$8 sps:$4 sm:$0xff]  }
  0x30   :  { %1053 = vmatpush1.bf16.msra.mxu0 %v4111_v27  ;;  %v4290_v27 = vld [vmem:[%s5540_s13 + $0x464] ss:$8 sps:$4 sm:$0xff]  }
  0x31   :  { %1054 = vmatprep.subr.bf16.mxu0 %v4112_v28  ;;  %1209 = vmatpush1.bf16.msra.mxu1 %v4283_v20  ;;  %v4181_v28 = vld [vmem:[%s5540_s13 + $0x1f4] ss:$8 sps:$4 sm:$0xff]  }
  0x32   :  { %1210 = vmatprep.subr.bf16.mxu1 %v4284_v23  ;;  %v4229_v20 = vld [vmem:[%s5540_s13 + $0x2f4] ss:$8 sps:$4 sm:$0xff]   ;;  %v4926_v23 = vrot.slane %v4759_v26, %v4553_v16 }
  0x34   :  { %1055 = vmatpush1.bf16.msra.mxu0 %v4114_v29  ;;  %v4295_v29 = vld [vmem:[%s5540_s13 + $0x460] ss:$8 sps:$4 sm:$0xff]  }
  0x35   :  { %1056 = vmatprep.subr.bf16.mxu0 %v4115_v30  ;;  %1211 = vmatpush1.bf16.msra.mxu1 %v4289_v25  ;;  %v4179_v30 = vld [vmem:[%s5540_s13 + $0x1f0] ss:$8 sps:$4 sm:$0xff]  }
  0x36   :  { %1212 = vmatprep.subr.bf16.mxu1 %v4290_v27  ;;  %v4236_v27 = vld [vmem:[%s5540_s13 + $0x320] ss:$8 sps:$4 sm:$0xff]  }
  0x38   :  { %1057 = vmatpush1.bf16.msra.mxu0 %v4117_v31  ;;  %v260_v31 = vcombine.high %v4759_v26, %v4759_v26  ;;  %v4238_v26 = vld [vmem:[%s5540_s13 + $0x324] ss:$8 sps:$4 sm:$0xff]  }
  0x39   :  { %1058 = vmatprep.subr.bf16.mxu0 %v4118_v32  ;;  %1213 = vmatpush1.bf16.msra.mxu1 %v4295_v29  ;;  %v4296_v32 = vld [vmem:[%s5540_s13 + $0x474] ss:$8 sps:$4 sm:$0xff]   ;;  %v4239_v29 = vld [vmem:[%s5540_s13 + $0x330] ss:$8 sps:$4 sm:$0xff]  }
  0x3a   :  { %1214 = vmatprep.subr.bf16.mxu1 %v4296_v32  ;;  %v4247_v32 = vld [vmem:[%s5540_s13 + $0x354] ss:$8 sps:$4 sm:$0xff]  }
  0x3c   :  { %1059 = vmatpush1.bf16.msra.mxu0 %v4120_v33  ;;  %v4184_v33 = vld [vmem:[%s5540_s13 + $0x204] ss:$8 sps:$4 sm:$0xff]  }
  0x3d   :  { %1060 = vmatprep.subr.bf16.mxu0 %v4121_v34  ;;  %v4301_v34 = vld [vmem:[%s5540_s13 + $0x470] ss:$8 sps:$4 sm:$0xff]  }
  0x3e   :  { %1215 = vmatpush1.bf16.msra.mxu1 %v4301_v34  ;;  %v4250_v34 = vld [vmem:[%s5540_s13 + $0x364] ss:$8 sps:$4 sm:$0xff]  }
  0x40   :  { %1061 = vmatpush1.bf16.msra.mxu0 %v4123_v35  ;;  %v289_v35 = vcombine.high %v4630_v43, %v4630_v43 }
  0x41   :  { %1062 = vmatprep.subr.bf16.mxu0 %v4124_v36  ;;  %v3409_v36 = vld.sshfl [vmem:[%s5541_s27 + $0x8] sm:$0x1 pattern:$0x75316420] }
  0x44   :  { %1063 = vmatpush1.bf16.msra.mxu0 %v4126_v37  ;;  %v4182_v37 = vld [vmem:[%s5540_s13 + $0x200] ss:$8 sps:$4 sm:$0xff]  }
  0x45   :  { %1064 = vmatprep.subr.bf16.mxu0 %v4127_v38  ;;  %v4793_v38 = vrot.slane %v260_v31, %v4553_v16  ;;  %v4242_v31 = vld [vmem:[%s5540_s13 + $0x340] ss:$8 sps:$4 sm:$0xff]  }
  0x47   :  { %v292_v25 = vcombine.high %v4793_v38, %v4793_v38 }
  0x48   :  { %1065 = vmatpush1.bf16.msra.mxu0 %v4129_v39  ;;  %v306_v39 = vrot.slane %v3409_v36, %v4553_v16  ;;  %v4233_v16 = vld [vmem:[%s5540_s13 + $0x310] ss:$8 sps:$4 sm:$0xff]   ;;  %v4248_v36 = vld [vmem:[%s5540_s13 + $0x360] ss:$8 sps:$4 sm:$0xff]  }
  0x49   :  { %1066 = vmatprep.subr.bf16.mxu0 %v4130_v40  ;;  %v4187_v40 = vld [vmem:[%s5540_s13 + $0x214] ss:$8 sps:$4 sm:$0xff]  }
  0x4c   :  { %1067 = vmatpush1.bf16.msra.mxu0 %v4132_v41  ;;  %v4373_v41 = vmov 0  }
  0x4d   :  { %1077 = vmatprep.subr.bf16.mxu0 %v4136_v42  ;;  %1232 = vmatprep.mubr.bf16.mxu1 %v4373_v41  ;;  %v4185_v42 = vld [vmem:[%s5540_s13 + $0x210] ss:$8 sps:$4 sm:$0xff]  }
  0x4e   :  { %1233 = vmatmul.mubr.bf16.vlgmr.msra.gmra.mrb[0].mxu1 %v306_v39  ;;  %v4258_v39 = vld [vmem:[%s5540_s13 + $0x384] ss:$8 sps:$4 sm:$0xff]  }
  0x4f   :  { %1069 = vmatmul.mubr.bf16.vlgmr.msra.gmra.mrb[0].mxu0 %v4630_v43  ;;  %v4190_v43 = vld [vmem:[%s5540_s13 + $0x224] ss:$8 sps:$4 sm:$0xff]  }
  0x50   :  { %1078 = vmatpush1.bf16.msra.mxu0 %v4134_v45  ;;  %1109 = vmatprep.mubr.bf16.mxu0 %v291_v44  ;;  %v4302_v44 = vld [vmem:[%s5542_s29 + $0x40] sm:$0xff]  }
  0x51   :  { %1079 = vmatprep.subr.bf16.mxu0 %v4139_v46  ;;  %v4303_v45 = vld [vmem:[%s5542_s29] sm:$0xff]   ;;  %3711 = vmatprep.subr.bf16.mxu1 %v4302_v44 }
  0x52   :  { %v4188_v46 = vld [vmem:[%s5540_s13 + $0x220] ss:$8 sps:$4 sm:$0xff]   ;;  %3712 = vmatpush3.bf16.msra.mxu1 %v4303_v45  ;;  %v4270_v44 = vld [vmem:[%s5540_s13 + $0x3a4] ss:$8 sps:$4 sm:$0xff]  }
  0x53   :  { %v4268_v45 = vld [vmem:[%s5540_s13 + $0x3a0] ss:$8 sps:$4 sm:$0xff]  }
  0x54   :  { %1080 = vmatpush1.bf16.msra.mxu0 %v4137_v47  ;;  %v4304_v47 = vld [vmem:[%s5542_s29 + $0x48] sm:$0xff]  }
  0x55   :  { %1081 = vmatprep.subr.bf16.mxu0 %v4142_v48  ;;  %v4305_v48 = vld [vmem:[%s5542_s29 + $0x8] sm:$0xff]   ;;  %3713 = vmatprep.subr.bf16.mxu1 %v4304_v47  ;;  %v4274_v47 = vld [vmem:[%s5540_s13 + $0x3b0] ss:$8 sps:$4 sm:$0xff]  }
  0x56   :  { %3714 = vmatpush3.bf16.msra.mxu1 %v4305_v48  ;;  %v4282_v48 = vld [vmem:[%s5540_s13 + $0x3c4] ss:$8 sps:$4 sm:$0xff]  }
  0x58   :  { %1082 = vmatpush1.bf16.msra.mxu0 %v4140_v49  ;;  %v4306_v49 = vld [vmem:[%s5542_s29 + $0x50] sm:$0xff]  }
  0x59   :  { %1083 = vmatprep.subr.bf16.mxu0 %v4145_v50  ;;  %v4193_v50 = vld [vmem:[%s5540_s13 + $0x234] ss:$8 sps:$4 sm:$0xff]   ;;  %3715 = vmatprep.subr.bf16.mxu1 %v4306_v49  ;;  %v4280_v49 = vld [vmem:[%s5540_s13 + $0x3c0] ss:$8 sps:$4 sm:$0xff]  }
  0x5c   :  { %1084 = vmatpush1.bf16.msra.mxu0 %v4143_v51  ;;  %v4191_v51 = vld [vmem:[%s5540_s13 + $0x230] ss:$8 sps:$4 sm:$0xff]  }
  0x5d   :  { %1085 = vmatprep.subr.bf16.mxu0 %v4148_v52  ;;  %v4196_v52 = vld [vmem:[%s5540_s13 + $0x244] ss:$8 sps:$4 sm:$0xff]  }
  0x60   :  { %1086 = vmatpush1.bf16.msra.mxu0 %v4146_v53  ;;  %v4307_v53 = vld [vmem:[%s5542_s29 + $0x10] sm:$0xff]  }
  0x61   :  { %1087 = vmatprep.subr.bf16.mxu0 %v4151_v54  ;;  %v4308_v54 = vld [vmem:[%s5542_s29 + $0x58] sm:$0xff]   ;;  %3716 = vmatpush3.bf16.msra.mxu1 %v4307_v53  ;;  %v4292_v53 = vld [vmem:[%s5540_s13 + $0x3e0] ss:$8 sps:$4 sm:$0xff]  }
  0x62   :  { %3717 = vmatprep.subr.bf16.mxu1 %v4308_v54  ;;  %v4300_v54 = vld [vmem:[%s5540_s13 + $0x3f4] ss:$8 sps:$4 sm:$0xff]  }
  0x64   :  { %1088 = vmatpush1.bf16.msra.mxu0 %v4149_v55  ;;  %v4309_v55 = vld [vmem:[%s5542_s29 + $0x18] sm:$0xff]  }
  0x65   :  { %1089 = vmatprep.subr.bf16.mxu0 %v4154_v56  ;;  %v4194_v56 = vld [vmem:[%s5540_s13 + $0x240] ss:$8 sps:$4 sm:$0xff]   ;;  %3718 = vmatpush3.bf16.msra.mxu1 %v4309_v55  ;;  %v4298_v55 = vld [vmem:[%s5540_s13 + $0x3f0] ss:$8 sps:$4 sm:$0xff]  }
  0x68   :  { %1090 = vmatpush1.bf16.msra.mxu0 %v4152_v57  ;;  %v4310_v57 = vld [vmem:[%s5542_s29 + $0x60] sm:$0xff]  }
  0x69   :  { %1091 = vmatprep.subr.bf16.mxu0 %v4157_v58  ;;  %v4199_v58 = vld [vmem:[%s5540_s13 + $0x254] ss:$8 sps:$4 sm:$0xff]   ;;  %3719 = vmatprep.subr.bf16.mxu1 %v4310_v57 }
  0x6c   :  { %1092 = vmatpush1.bf16.msra.mxu0 %v4155_v59  ;;  %v4311_v59 = vld [vmem:[%s5542_s29 + $0x20] sm:$0xff]  }
  0x6d   :  { %1093 = vmatprep.subr.bf16.mxu0 %v4160_v60  ;;  %v4197_v60 = vld [vmem:[%s5540_s13 + $0x250] ss:$8 sps:$4 sm:$0xff]   ;;  %3720 = vmatpush3.bf16.msra.mxu1 %v4311_v59 }
  0x70   :  { %1094 = vmatpush1.bf16.msra.mxu0 %v4158_v61  ;;  %v4312_v61 = vld [vmem:[%s5542_s29 + $0x68] sm:$0xff]  }
  0x71   :  { %1095 = vmatprep.subr.bf16.mxu0 %v4163_v63  ;;  %v4200_v63 = vld [vmem:[%s5540_s13 + $0x260] ss:$8 sps:$4 sm:$0xff]   ;;  %3721 = vmatprep.subr.bf16.mxu1 %v4312_v61 }
  0x74   :  { %1096 = vmatpush1.bf16.msra.mxu0 %v4161_v1  ;;  %v4203_v1 = vld [vmem:[%s5540_s13 + $0x270] ss:$8 sps:$4 sm:$0xff]  }
  0x75   :  { %1097 = vmatprep.subr.bf16.mxu0 %v4166_v3  ;;  %v4206_v3 = vld [vmem:[%s5540_s13 + $0x280] ss:$8 sps:$4 sm:$0xff]  }
  0x78   :  { %1098 = vmatpush1.bf16.msra.mxu0 %v4164_v5  ;;  %v4209_v5 = vld [vmem:[%s5540_s13 + $0x290] ss:$8 sps:$4 sm:$0xff]  }
  0x79   :  { %1099 = vmatprep.subr.bf16.mxu0 %v4169_v8  ;;  %v4212_v8 = vld [vmem:[%s5540_s13 + $0x2a0] ss:$8 sps:$4 sm:$0xff]  }
  0x7c   :  { %1100 = vmatpush1.bf16.msra.mxu0 %v4167_v10  ;;  %v4215_v10 = vld [vmem:[%s5540_s13 + $0x2b0] ss:$8 sps:$4 sm:$0xff]  }
  0x7d   :  { %1101 = vmatprep.subr.bf16.mxu0 %v4172_v13  ;;  %v4218_v13 = vld [vmem:[%s5540_s13 + $0x2c0] ss:$8 sps:$4 sm:$0xff]  }
  0x80   :  { %1102 = vmatpush1.bf16.msra.mxu0 %v4170_v15  ;;  %v4221_v15 = vld [vmem:[%s5540_s13 + $0x2d0] ss:$8 sps:$4 sm:$0xff]  }
  0x81   :  { %1103 = vmatprep.subr.bf16.mxu0 %v4175_v18  ;;  %v4224_v18 = vld [vmem:[%s5540_s13 + $0x2e0] ss:$8 sps:$4 sm:$0xff]  }
  0x84   :  { %1104 = vmatpush1.bf16.msra.mxu0 %v4173_v22  ;;  %v4232_v22 = vld [vmem:[%s5540_s13 + $0x304] ss:$8 sps:$4 sm:$0xff]  }
  0x85   :  { %1105 = vmatprep.subr.bf16.mxu0 %v4178_v24  ;;  %v4230_v24 = vld [vmem:[%s5540_s13 + $0x300] ss:$8 sps:$4 sm:$0xff]  }
  0x88   :  { %1106 = vmatpush1.bf16.msra.mxu0 %v4176_v19  ;;  %v4235_v19 = vld [vmem:[%s5540_s13 + $0x314] ss:$8 sps:$4 sm:$0xff]  }
  0x89   :  { %1107 = vmatprep.subr.bf16.mxu0 %v4181_v28  ;;  %v4241_v28 = vld [vmem:[%s5540_s13 + $0x334] ss:$8 sps:$4 sm:$0xff]  }
  0x8c   :  { %1108 = vmatpush1.bf16.msra.mxu0 %v4179_v30  ;;  %v4244_v30 = vld [vmem:[%s5540_s13 + $0x344] ss:$8 sps:$4 sm:$0xff]  }
  0x8d   :  { %1118 = vmatprep.subr.bf16.mxu0 %v4184_v33  ;;  %v4245_v33 = vld [vmem:[%s5540_s13 + $0x350] ss:$8 sps:$4 sm:$0xff]  }
  0x8f   :  { %1110 = vmatmul.mubr.bf16.vlgmr.msra.gmra.mrb[0].mxu0 %v289_v35  ;;  %v4313_v35 = vld [vmem:[%s5542_s29 + $0x28] sm:$0xff]  }
  0x90   :  { %1119 = vmatpush1.bf16.msra.mxu0 %v4182_v37  ;;  %1150 = vmatprep.mubr.bf16.mxu0 %v4793_v38  ;;  %v4253_v37 = vld [vmem:[%s5540_s13 + $0x374] ss:$8 sps:$4 sm:$0xff]   ;;  %v4251_v38 = vld [vmem:[%s5540_s13 + $0x370] ss:$8 sps:$4 sm:$0xff]  }
  0x91   :  { %1120 = vmatprep.subr.bf16.mxu0 %v4187_v40  ;;  %3722 = vmatpush3.bf16.msra.mxu1 %v4313_v35  ;;  %v4256_v40 = vld [vmem:[%s5540_s13 + $0x380] ss:$8 sps:$4 sm:$0xff]  }
  0x94   :  { %1121 = vmatpush1.bf16.msra.mxu0 %v4185_v42  ;;  %v4264_v42 = vld [vmem:[%s5540_s13 + $0x394] ss:$8 sps:$4 sm:$0xff]  }
  0x95   :  { %1122 = vmatprep.subr.bf16.mxu0 %v4190_v43  ;;  %v4262_v43 = vld [vmem:[%s5540_s13 + $0x390] ss:$8 sps:$4 sm:$0xff]  }
  0x98   :  { %1123 = vmatpush1.bf16.msra.mxu0 %v4188_v46  ;;  %v4276_v46 = vld [vmem:[%s5540_s13 + $0x3b4] ss:$8 sps:$4 sm:$0xff]  }
  0x99   :  { %1124 = vmatprep.subr.bf16.mxu0 %v4193_v50  ;;  %v4288_v50 = vld [vmem:[%s5540_s13 + $0x3d4] ss:$8 sps:$4 sm:$0xff]  }
  0x9c   :  { %1125 = vmatpush1.bf16.msra.mxu0 %v4191_v51  ;;  %v4286_v51 = vld [vmem:[%s5540_s13 + $0x3d0] ss:$8 sps:$4 sm:$0xff]  }
  0x9d   :  { %1126 = vmatprep.subr.bf16.mxu0 %v4196_v52  ;;  %v4294_v52 = vld [vmem:[%s5540_s13 + $0x3e4] ss:$8 sps:$4 sm:$0xff]   ;;  %s5549_s13 = sld [smem:[#allocation10_spill]] }
  0xa0   :  { %1127 = vmatpush1.bf16.msra.mxu0 %v4194_v56  ;;  %v290_v56 = vcombine.high %v4926_v23, %v4926_v23 }
  0xa1   :  { %1128 = vmatprep.subr.bf16.mxu0 %v4199_v58 }
  0xa4   :  { %1129 = vmatpush1.bf16.msra.mxu0 %v4197_v60  ;;  %v4314_v60 = vld [vmem:[%s5542_s29 + $0x70] sm:$0xff]  }
  0xa5   :  { %1130 = vmatprep.subr.bf16.mxu0 %v4202_v62  ;;  %v4315_v62 = vld [vmem:[%s5542_s29 + $0x30] sm:$0xff]   ;;  %3723 = vmatprep.subr.bf16.mxu1 %v4314_v60  ;;  %v4329_v60 = vld [vmem:[%s5507_s15 + $0x8] sm:$0xff]  }
  0xa6   :  { %3724 = vmatpush3.bf16.msra.mxu1 %v4315_v62  ;;  %v1673_v62 = vld [vmem:[%s5509_s14] sm:$0x3] }
  0xa8   :  { %1131 = vmatpush1.bf16.msra.mxu0 %v4200_v63  ;;  %v4316_v63 = vld [vmem:[%s5542_s29 + $0x78] sm:$0xff]  }
  0xa9   :  { %1132 = vmatprep.subr.bf16.mxu0 %v4205_v0  ;;  %v4317_v0 = vld [vmem:[%s5542_s29 + $0x38] sm:$0xff]   ;;  %3725 = vmatprep.subr.bf16.mxu1 %v4316_v63  ;;  %s5547_s29 = sld [smem:[#allocation9_spill]] }
  0xaa   :  { %3726 = vmatpush3.bf16.msra.mxu1 %v4317_v0 }
  0xac   :  { %1133 = vmatpush1.bf16.msra.mxu0 %v4203_v1  ;;  %v4374_v1 = vmov 0.0  }
  0xad   :  { %1134 = vmatprep.subr.bf16.mxu0 %v4208_v2  ;;  %3815 = vmatprep.subr.bf16.mxu1 %v4374_v1  ;;  %v234_v2 = vsub.s32 0, %v4544_v12 }
  0xaf   :  { %v1678_v63 = vrot.slane %v1673_v62, %v234_v2 }
  0xb0   :  { %1135 = vmatpush1.bf16.msra.mxu0 %v4206_v3  ;;  %v230_v3 = vld [vmem:[%s5543_s10] sm:$0x3] }
  0xb1   :  { %1136 = vmatprep.subr.bf16.mxu0 %v4211_v4  ;;  %v238_v4 = vsub.s32 1, %v4544_v12  ;;  %v4330_v12 = vld [vmem:[%s5510_s17] sm:$0xff]  }
  0xb4   :  { %1137 = vmatpush1.bf16.msra.mxu0 %v4209_v5  ;;  %v235_v5 = vrot.slane %v230_v3, %v234_v2  ;;  %v3585_v2 = vld [vmem:[%s5511_s16] ss:$0 sm:$0xff]  ;;  %s4377_s16 = smov 96  }
  0xb5   :  { %1138 = vmatprep.subr.bf16.mxu0 %v4214_v6  ;;  %v239_v6 = vrot.slane %v230_v3, %v238_v4  ;;  %v1682_v3 = vrot.slane %v1673_v62, %v238_v4 }
  0xb8   :  { %1139 = vmatpush1.bf16.msra.mxu0 %v4212_v8 }
  0xb9   :  { %1140 = vmatprep.subr.bf16.mxu0 %v4217_v9 }
  0xbc   :  { %1141 = vmatpush1.bf16.msra.mxu0 %v4215_v10 }
  0xbd   :  { %1142 = vmatprep.subr.bf16.mxu0 %v4220_v11 }
  0xc0   :  { %1143 = vmatpush1.bf16.msra.mxu0 %v4218_v13 }
  0xc1   :  { %1144 = vmatprep.subr.bf16.mxu0 %v4223_v14 }
  0xc4   :  { %1145 = vmatpush1.bf16.msra.mxu0 %v4221_v15 }
  0xc5   :  { %1146 = vmatprep.subr.bf16.mxu0 %v4226_v17 }
  0xc8   :  { %1147 = vmatpush1.bf16.msra.mxu0 %v4224_v18 }
  0xc9   :  { %1148 = vmatprep.subr.bf16.mxu0 %v4229_v20 }
  0xcc   :  { %1149 = vmatpush1.bf16.msra.mxu0 %v4227_v21 }
  0xcd   :  { %1159 = vmatprep.subr.bf16.mxu0 %v4232_v22  ;;  %v4318_v22 = vld [vmem:[%s5544_s0] sm:$0xff]  }
  0xcf   :  { %1151 = vmatmul.mubr.bf16.vlgmr.msra.gmra.mrb[0].mxu0 %v4926_v23 }
  0xd0   :  { %1160 = vmatpush1.bf16.msra.mxu0 %v4230_v24  ;;  %1191 = vmatprep.mubr.bf16.mxu0 %v292_v25  ;;  %v4319_v24 = vld [vmem:[%s5544_s0 + $0x8] ss:$0 sps:$4 sm:$0x33]   ;;  %v1420_v25 = vld [vmem:[%s5545_s1] sm:$0x3] }
  0xd1   :  { %1161 = vmatprep.subr.bf16.mxu0 %v4235_v19  ;;  %v1447_v19 = vsel %vm1445_vm0, %v4319_v24, 0 }
  0xd4   :  { %1162 = vmatpush1.bf16.msra.mxu0 %v4233_v16  ;;  %v1424_v16 = vpack.c.bf16 %v1420_v25, %v1420_v25 }
  0xd5   :  { %1163 = vmatprep.subr.bf16.mxu0 %v4238_v26  ;;  %v4320_v26 = vld [vmem:[%s5546_s30] sm:$0xff]  }
  0xd8   :  { %1164 = vmatpush1.bf16.msra.mxu0 %v4236_v27  ;;  %v4321_v27 = vld [vmem:[%s5546_s30 + $0x8] sm:$0xff]  }
  0xd9   :  { %1165 = vmatprep.subr.bf16.mxu0 %v4241_v28  ;;  %v4324_v28 = vld [vmem:[%s5547_s29 + $0x4] ss:$8 sps:$4 sm:$0xff]  }
  0xdc   :  { %1166 = vmatpush1.bf16.msra.mxu0 %v4239_v29 }
  0xdd   :  { %1167 = vmatprep.subr.bf16.mxu0 %v4244_v30 }
  0xe0   :  { %1168 = vmatpush1.bf16.msra.mxu0 %v4242_v31 }
  0xe1   :  { %1169 = vmatprep.subr.bf16.mxu0 %v4247_v32 }
  0xe4   :  { %1170 = vmatpush1.bf16.msra.mxu0 %v4245_v33 }
  0xe5   :  { %1171 = vmatprep.subr.bf16.mxu0 %v4250_v34  ;;  %v3571_v34 = vld [vmem:[%s5548_s8] ss:$0 sm:$0xff]  ;;  %s4380_s8 = smov 64  }
  0xe8   :  { %1172 = vmatpush1.bf16.msra.mxu0 %v4248_v36 }
  0xe9   :  { %1173 = vmatprep.subr.bf16.mxu0 %v4253_v37 }
  0xec   :  { %1174 = vmatpush1.bf16.msra.mxu0 %v4251_v38 }
  0xed   :  { %1175 = vmatprep.subr.bf16.mxu0 %v4258_v39 }
  0xf0   :  { %1176 = vmatpush1.bf16.msra.mxu0 %v4256_v40 }
  0xf1   :  { %1177 = vmatprep.subr.bf16.mxu0 %v4264_v42  ;;  %v4322_v42 = vld [vmem:[%s5547_s29] ss:$8 sps:$4 sm:$0xff]  }
  0xf4   :  { %1178 = vmatpush1.bf16.msra.mxu0 %v4262_v43 }
  0xf5   :  { %1179 = vmatprep.subr.bf16.mxu0 %v4270_v44  ;;  %v4327_v44 = vld [vmem:[%s5549_s13 + $0x4] ss:$8 sps:$4 sm:$0xff]  }
  0xf8   :  { %1180 = vmatpush1.bf16.msra.mxu0 %v4268_v45  ;;  %v3554_v45 = vld [vmem:[%s5550_s4] ss:$0 sm:$0xff] }
  0xf9   :  { %1181 = vmatprep.subr.bf16.mxu0 %v4276_v46 }
  0xfc   :  { %1182 = vmatpush1.bf16.msra.mxu0 %v4274_v47  ;;  %v4325_v47 = vld [vmem:[%s5549_s13] ss:$8 sps:$4 sm:$0xff]  }
  0xfd   :  { %1183 = vmatprep.subr.bf16.mxu0 %v4282_v48 }
 0x100   :  { %1184 = vmatpush1.bf16.msra.mxu0 %v4280_v49  ;;  %v3575_v49 = vld [vmem:[%s5506_s11] ss:$0 sm:$0xff]  ;;  %s4379_s11 = smov 112  }
 0x101   :  { %1185 = vmatprep.subr.bf16.mxu0 %v4288_v50 }
 0x104   :  { %1186 = vmatpush1.bf16.msra.mxu0 %v4286_v51 }
 0x105   :  { %1187 = vmatprep.subr.bf16.mxu0 %v4294_v52 }
 0x108   :  { %1188 = vmatpush1.bf16.msra.mxu0 %v4292_v53 }
 0x109   :  { %1189 = vmatprep.subr.bf16.mxu0 %v4300_v54 }
 0x10c   :  { %1190 = vmatpush1.bf16.msra.mxu0 %v4298_v55 }
 0x10f   :  { %1192 = vmatmul.mubr.bf16.vlgmr.msra.gmra.mrb[0].mxu0 %v290_v56 }
 0x121   :  { %v1234_v57 = vpop.f32.mrb[0].mxu1 }
 0x122   :  { %v1236_v58 = vpop.f32.mrb[1].mxu1 }
 0x123   :  { %v1238_v59 = vpop.f32.mrb[2].mxu1 }
 0x124   :  { %v1239_v61 = vpop.f32.mrb[3].mxu1  ;;  %v4328_v59 = vld [vmem:[%s5507_s15] sm:$0xff]  }
 0x125   :  { %v5113_v61 = vld [vmem:[%s5508_s2] sm:$0x3] }
 0x126   :  { %1759 = vrot.lane.b32.xlu0 %v5113_v61, %s4376_s5 }
 0x198   :  { %v1760_v24 = vpop.permute.xlu0 %1759 }
 0x1e2   :  { %v1193_v8 = vpop.f32.mrb[0].mxu0 }
 0x1e3   :  { %v4060_v9 = vadd.f32 %v1193_v8, %v235_v5  ;;  %v1195_v10 = vpop.f32.mrb[1].mxu0 }
 0x1e4   :  { %v4062_v11 = vadd.f32 %v1195_v10, %v239_v6  ;;  %v1197_v13 = vpop.f32.mrb[2].mxu0 }
 0x1e5   :  { %v4061_v14 = vadd.f32 %v4060_v9, %v1234_v57  ;;  %v1198_v15 = vpop.f32.mrb[3].mxu0 }
 0x1e6   :  { %v4063_v17 = vadd.f32 %v4062_v11, %v1236_v58 }
 0x1e7   :  { %v1241_v18 = vmax.f32 %v4061_v14, 0.0 }
 0x1e8   :  { %v1242_v20 = vmax.f32 %v4063_v17, 0.0 }
 0x1e9   :  { %v1275_v23 = vpack.c.bf16 %v1241_v18, %v1241_v18 }
 0x1ea   :  { %v1276_v21 = vpack.c.bf16 %v1242_v20, %v1242_v20 }
 0x1ec   :  { %1412 = vmatprep.mubr.bf16.mxu1 %v1276_v21 }
 0x1ed   :  { %1413 = vmatmul.mubr.bf16.vlgmr.msra.gmra.mrb[4].mxu1 %v1275_v23  ;;  %v4331_v23 = vld [vmem:[%s5510_s17 + $0x8] sm:$0xff]  }
 0x1ee   :  { %3816 = vmatpush3.bf16.msra.mxu1 %v4318_v22  ;;  %3819 = vmatprep.mubr.msk.bf16.mxu1 %vm4375_vm1, %v4374_v1 }
 0x1ef   :  { %3817 = vmatprep.subr.bf16.mxu1 %v4374_v1 }
 0x1f2   :  { %3818 = vmatpush3.bf16.msra.mxu1 %v1447_v19 }
 0x1f3   :  { %3823 = vmatprep.subr.bf16.mxu1 %v4374_v1 }
 0x1f5   :  { %3820 = vmatmul.mubr.msk.bf16.vlgmr.msra.gmra.mrb[8].mxu1 %vm1441_vm2, %v1424_v16 }
 0x1f6   :  { %3827 = vmatprep.mubr.msk.bf16.mxu1 %vm4375_vm1, %v4374_v1  ;;  %3824 = vmatpush3.bf16.msra.mxu1 %v4320_v26 }
 0x1f7   :  { %3825 = vmatprep.subr.bf16.mxu1 %v4374_v1 }
 0x1fa   :  { %3826 = vmatpush3.bf16.msra.mxu1 %v4321_v27  ;;  %v4332_v27 = vld [vmem:[%s5512_s21] sm:$0xff]  }
 0x1fb   :  { %1578 = vmatprep.subr.bf16.mxu1 %v4324_v28 }
 0x2c0   :  { %v3727_v29 = vpop.f32.mrb[4].mxu1 }
 0x2c1   :  { %v3728_v30 = vpop.f32.mrb[5].mxu1 }
 0x2c2   :  { %v3729_v31 = vadd.f32 %v3728_v30, %v3727_v29  ;;  %v3730_v32 = vpop.f32.mrb[6].mxu1  ;;  %v4333_v29 = vld [vmem:[%s5512_s21 + $0x8] sm:$0xff]  }
 0x2c3   :  { %v3731_v33 = vpop.f32.mrb[7].mxu1 }
 0x2c4   :  { %v1415_v46 = vadd.f32 %v3729_v31, %v3554_v45 }
 0x2c6   :  { %v1563_v48 = vpack.c.bf16 %v1415_v46, %v1415_v46 }
 0x2c8   :  { %v1483_v35 = vpop.f32.mrb[8].mxu1 }
 0x2c9   :  { %v1484_v36 = vadd.f32 %v3571_v34, %v1483_v35  ;;  %v3821_v37 = vpop.f32.mrb[9].mxu1 }
 0x2ca   :  { %v1486_v38 = vpop.f32.mrb[10].mxu1  ;;  %v4334_v37 = vld [vmem:[%s5513_s23] sm:$0xff]  }
 0x2cb   :  { %v1489_v39 = vmax.f32 %v1484_v36, 0.0  ;;  %v3822_v40 = vpop.f32.mrb[11].mxu1  ;;  %v4335_v38 = vld [vmem:[%s5513_s23 + $0x8] sm:$0xff]  }
 0x2cc   :  { %v3593_v40 = vld [vmem:[%s5514_s22] ss:$0 sm:$0xff] }
 0x2cd   :  { %v1494_v43 = vpack.c.bf16 %v1489_v39, %v1489_v39  ;;  %v4378_v39 = vmov 0.0|0.0  }
 0x2cf   :  { %3828 = vmatmul.mubr.msk.bf16.vlgmr.msra.gmra.mrb[12].mxu1 %vm1514_vm3, %v1494_v43 }
 0x2d0   :  { %1579 = vmatpush1.bf16.msra.mxu1 %v4322_v42  ;;  %1610 = vmatprep.mubr.bf16.mxu1 %v4373_v41 }
 0x2d1   :  { %1632 = vmatprep.subr.bf16.mxu1 %v4327_v44 }
 0x2d7   :  { %3581 = vmatmul.mubr.msk.bf16.vlgmr.msra.gmra.mrb[16].mxu1 %vm1574_vm4, %v1563_v48  ;;  %v1981_v48 = vld [vmem:[%s5515_s18] sm:$0xff] }
 0x2d8   :  { %1633 = vmatpush1.bf16.msra.mxu1 %v4325_v47  ;;  %1664 = vmatprep.mubr.bf16.mxu1 %v4373_v41 }
 0x2d9   :  { %3831 = vmatprep.subr.bf16.mxu1 %v4374_v1 }
 0x3a2   :  { %v1552_v50 = vpop.f32.mrb[12].mxu1 }
 0x3a3   :  { %v1553_v51 = vadd.f32 %v3575_v49, %v1552_v50  ;;  %v3829_v52 = vpop.f32.mrb[13].mxu1  ;;  %v1982_v49 = vld [vmem:[%s5515_s18 + $0x8] sm:$0xff] }
 0x3a4   :  { %v1555_v53 = vpop.f32.mrb[14].mxu1 }
 0x3a5   :  { %v1560_v54 = vpack.c.bf16 %v1553_v51, %v1553_v51  ;;  %v3830_v55 = vpop.f32.mrb[15].mxu1  ;;  %v4019_v51 = vpack.c.bf16 %v1982_v49, %v1981_v48  ;;  %v1983_v53 = vld [vmem:[%s5515_s18 + $0x10] sm:$0xff]  ;;  %v3625_v49 = vld [vmem:[%s5516_s24 + $0x1] ss:$0 sm:$0xff] }
 0x3a7   :  { %3584 = vmatmul.mubr.msk.bf16.vlgmr.msra.gmra.mrb[20].mxu1 %vm1574_vm4, %v1560_v54  ;;  %v1984_v54 = vld [vmem:[%s5515_s18 + $0x18] sm:$0xff] }
 0x3a8   :  { %3835 = vmatprep.mubr.msk.bf16.mxu1 %vm4375_vm1, %v4374_v1  ;;  %3832 = vmatpush3.bf16.msra.mxu1 %v4328_v59  ;;  %v4022_v55 = vpack.c.bf16 %v1984_v54, %v1983_v53 }
 0x3a9   :  { %3833 = vmatprep.subr.bf16.mxu1 %v4374_v1 }
 0x3aa   :  { %v1612_v56 = vpop.f32.mrb[16].mxu1 }
 0x3ab   :  { %v1614_v57 = vpop.f32.mrb[17].mxu1 }
 0x3ac   :  { %v1616_v41 = vpop.f32.mrb[18].mxu1  ;;  %3834 = vmatpush3.bf16.msra.mxu1 %v4329_v60 }
 0x3ad   :  { %v1617_v58 = vpop.f32.mrb[19].mxu1  ;;  %3839 = vmatprep.subr.bf16.mxu1 %v4374_v1 }
 0x47a   :  { %v1666_v0 = vpop.f32.mrb[20].mxu1 }
 0x47b   :  { %v1667_v5 = vadd.f32 %v1666_v0, %v1612_v56  ;;  %v1668_v6 = vpop.f32.mrb[21].mxu1  ;;  %v3597_v56 = vld [vmem:[%s5516_s24] ss:$0 sm:$0xff] }
 0x47c   :  { %v1669_v8 = vadd.f32 %v1668_v6, %v1614_v57  ;;  %v1670_v9 = vpop.f32.mrb[22].mxu1  ;;  %v2083_v0 = vld [vmem:[%s5517_s19] sm:$0xff] }
 0x47d   :  { %v5124_v10 = vadd.f32 %v1678_v63, %v1667_v5  ;;  %v1671_v11 = vpop.f32.mrb[23].mxu1 }
 0x47e   :  { %v1686_v13 = vadd.f32 %v1682_v3, %v1669_v8  ;;  %v2084_v3 = vld [vmem:[%s5517_s19 + $0x8] sm:$0xff] }
 0x47f   :  { %v4025_v6 = vpack.c.bf16 %v2084_v3, %v2083_v0  ;;  %v4342_v3 = vld [vmem:[%s5510_s17 + $0x20] sm:$0xff]  }
 0x480   :  { %v1687_v14 = vmax.f32 %v1686_v13, 0.0 }
 0x482   :  { %v1692_v15 = vpack.c.bf16 %v1687_v14, %v1687_v14  ;;  %v4336_v14 = vld [vmem:[%s5510_s17 + $0x10] sm:$0xff]  }
 0x484   :  { %3836 = vmatmul.mubr.msk.bf16.vlgmr.msra.gmra.mrb[24].mxu1 %vm1514_vm3, %v1692_v15 }
 0x485   :  { %3843 = vmatprep.mubr.msk.bf16.mxu1 %vm4375_vm1, %v4374_v1  ;;  %3840 = vmatpush3.bf16.msra.mxu1 %v4330_v12  ;;  %v4337_v12 = vld [vmem:[%s5510_s17 + $0x18] sm:$0xff]  }
 0x486   :  { %3841 = vmatprep.subr.bf16.mxu1 %v4374_v1 }
 0x489   :  { %3842 = vmatpush3.bf16.msra.mxu1 %v4331_v23  ;;  %v4339_v23 = vld [vmem:[%s5512_s21 + $0x18] sm:$0xff]  }
 0x48a   :  { %3847 = vmatprep.subr.bf16.mxu1 %v4374_v1 }
 0x557   :  { %v1749_v4 = vpop.f32.mrb[24].mxu1 }
 0x558   :  { %v5136_v17 = vadd.f32 %v3585_v2, %v1749_v4  ;;  %v3837_v18 = vpop.f32.mrb[25].mxu1 }
 0x559   :  { %v1752_v20 = vpop.f32.mrb[26].mxu1 }
 0x55a   :  { %v1756_v21 = vmul.f32 1.442695, %v5136_v17  ;;  %v3838_v22 = vpop.f32.mrb[27].mxu1 }
 0x55c   :  { %4354 = vpow2.f32 %v1756_v21  ;;  %v4338_v21 = vld [vmem:[%s5512_s21 + $0x10] sm:$0xff]  }
 0x566   :  { %v4355_v25 = vpop.eup %4354 }
 0x567   :  { %v1762_v19 = vmul.f32 %v4355_v25, %v1760_v24 }
 0x569   :  { %1764 = vrot.lane.b32.xlu0 %v1762_v19, %s4377_s16 }
 0x5db   :  { %v1765_v16 = vpop.permute.xlu0 %1764 }
 0x5dc   :  { %v5145_v26 = vadd.f32 %v1765_v16, %v5136_v17 }
 0x5de   :  { %v1787_v28 = vpack.c.bf16 %v5145_v26, %v5145_v26 }
 0x5e0   :  { %3844 = vmatmul.mubr.msk.bf16.vlgmr.msra.gmra.mrb[28].mxu1 %vm1514_vm3, %v1787_v28 }
 0x5e1   :  { %3848 = vmatpush3.bf16.msra.mxu1 %v4332_v27  ;;  %3851 = vmatprep.mubr.msk.bf16.mxu1 %vm4375_vm1, %v4374_v1 }
 0x5e2   :  { %3849 = vmatprep.subr.bf16.mxu1 %v4374_v1 }
 0x5e5   :  { %3850 = vmatpush3.bf16.msra.mxu1 %v4333_v29 }
 0x5e6   :  { %3855 = vmatprep.subr.bf16.mxu1 %v4374_v1 }
 0x6b3   :  { %v1837_v30 = vpop.f32.mrb[28].mxu1 }
 0x6b4   :  { %v1838_v31 = vadd.f32 %v1837_v30, %v5124_v10  ;;  %v3845_v32 = vpop.f32.mrb[29].mxu1  ;;  %v4340_v30 = vld [vmem:[%s5513_s23 + $0x10] sm:$0xff]  }
 0x6b5   :  { %v1840_v33 = vpop.f32.mrb[30].mxu1  ;;  %v3616_v32 = vld [vmem:[%s5514_s22 + $0x1] ss:$0 sm:$0xff] }
 0x6b6   :  { %v1843_v34 = vmax.f32 %v1838_v31, 0.0  ;;  %v3846_v35 = vpop.f32.mrb[31].mxu1  ;;  %v4341_v31 = vld [vmem:[%s5513_s23 + $0x18] sm:$0xff]  }
 0x6b8   :  { %v1848_v36 = vpack.c.bf16 %v1843_v34, %v1843_v34 }
 0x6ba   :  { %3852 = vmatmul.mubr.msk.bf16.vlgmr.msra.gmra.mrb[32].mxu1 %vm1514_vm3, %v1848_v36 }
 0x6bb   :  { %3859 = vmatprep.mubr.msk.bf16.mxu1 %vm4375_vm1, %v4374_v1  ;;  %3856 = vmatpush3.bf16.msra.mxu1 %v4334_v37 }
 0x6bc   :  { %3857 = vmatprep.subr.bf16.mxu1 %v4374_v1 }
 0x6bf   :  { %3858 = vmatpush3.bf16.msra.mxu1 %v4335_v38 }
 0x6c0   :  { %4018 = vmatprep.subr.bf16.mxu1 %v4378_v39 }
 0x78d   :  { %v1905_v42 = vpop.f32.mrb[32].mxu1 }
 0x78e   :  { %v1906_v43 = vadd.f32 %v3593_v40, %v1905_v42  ;;  %v3853_v44 = vpop.f32.mrb[33].mxu1  ;;  %v3629_v40 = vld [vmem:[%s5515_s18 + $0x20] sm:$0xff]  ;;  %v3630_v42 = vld [vmem:[%s5515_s18 + $0x28] sm:$0xff] }
 0x78f   :  { %v1908_v45 = vpop.f32.mrb[34].mxu1  ;;  %v4028_v44 = vpack.c.bf16 %v3630_v42, %v3629_v40  ;;  %v3667_v40 = vld [vmem:[%s5515_s18 + $0x58] sm:$0xff] }
 0x790   :  { %v1911_v46 = vmax.f32 %v1906_v43, 0.0  ;;  %v3854_v47 = vpop.f32.mrb[35].mxu1 }
 0x791   :  { %v3632_v47 = vld [vmem:[%s5515_s18 + $0x38] sm:$0xff] }
 0x792   :  { %v1912_v50 = vadd.f32 %v1911_v46, %v1843_v34  ;;  %v3631_v46 = vld [vmem:[%s5515_s18 + $0x30] sm:$0xff] }
 0x793   :  { %v4031_v48 = vpack.c.bf16 %v3632_v47, %v3631_v46 }
 0x794   :  { %v1917_v52 = vpack.c.bf16 %v1912_v50, %v1912_v50 }
 0x796   :  { %3860 = vmatmul.mubr.msk.bf16.vlgmr.msra.gmra.mrb[36].mxu1 %vm1514_vm3, %v1917_v52 }
 0x797   :  { %4020 = vmatpush3.bf16.msra.mxu1 %v4019_v51  ;;  %3871 = vmatprep.mubr.msk.f32.mxu1 %vm4375_vm1, %v4374_v1 }
 0x798   :  { %4021 = vmatprep.subr.bf16.mxu1 %v4378_v39 }
 0x79b   :  { %4023 = vmatpush3.bf16.msra.mxu1 %v4022_v55 }
 0x79c   :  { %4024 = vmatprep.subr.bf16.mxu1 %v4378_v39 }
 0x79e   :  { %3872 = vmatmul.mubr.msk.f32.vlgmr.msra.gmra.mrb[40].mxu1 %vm1514_vm3, %v5145_v26 }
 0x79f   :  { %3878 = vmatprep.mubr.msk.f32.mxu1 %vm4375_vm1, %v4374_v1  ;;  %4026 = vmatpush3.bf16.msra.mxu1 %v4025_v6 }
 0x7a0   :  { %3881 = vmatprep.subr.bf16.mxu1 %v4374_v1 }
 0x869   :  { %v1974_v57 = vpop.f32.mrb[36].mxu1 }
 0x86a   :  { %v1975_v41 = vadd.f32 %v3597_v56, %v1974_v57  ;;  %v3861_v58 = vpop.f32.mrb[37].mxu1  ;;  %v3636_v57 = vld [vmem:[%s5517_s19 + $0x10] sm:$0xff] }
 0x86b   :  { %v1977_v59 = vpop.f32.mrb[38].mxu1 }
 0x86c   :  { %4356 = vtanh.f32 %v1975_v41  ;;  %v3862_v60 = vpop.f32.mrb[39].mxu1 }
 0x871   :  { %v2054_v62 = vpop.f32.mrb[40].mxu1 }
 0x872   :  { %v3873_v63 = vpop.f32.mrb[41].mxu1 }
 0x876   :  { %v5205_v5 = vpop.eup %4356 }
 0x877   :  { %v2058_v8 = vmul.f32 1.442695, %v5205_v5 }
 0x879   :  { %4358 = vpow2.f32 %v2058_v8  ;;  %v4343_v8 = vld [vmem:[%s5510_s17 + $0x28] sm:$0xff]  }
 0x883   :  { %v4359_v9 = vpop.eup %4358 }
 0x884   :  { %2061 = vrot.lane.b32.xlu1 %v4359_v9, %s4379_s11  ;;  %v3635_v9 = vld [vmem:[%s5518_s20 + $0x1] ss:$0 sm:$0xff] }
 0x888   :  { %2178 = vrot.lane.b32.xlu1 %v5124_v10, %s4377_s16 }
 0x88c   :  { %2564 = vrot.lane.b32.xlu1 %v5124_v10, %s4380_s8 }
 0x890   :  { %2950 = vrot.lane.b32.xlu1 %v5124_v10, %s4376_s5  ;;  %v3602_v10 = vld [vmem:[%s5518_s20] ss:$0 sm:$0xff] }
 0x891   :  { %v2082_v2 = vmul.f32 %v3602_v10, %v5145_v26 }
 0x8f6   :  { %v2062_v11 = vpop.permute.xlu1 %2061 }
 0x8f7   :  { %v2064_v13 = vmul.f32 %v2062_v11, %v2054_v62 }
 0x8f9   :  { %v2065_v15 = vadd.f32 %v2064_v13, %v1975_v41  ;;  %v3637_v41 = vld [vmem:[%s5517_s19 + $0x18] sm:$0xff] }
 0x8fa   :  { %v2179_v24 = vpop.permute.xlu1 %2178  ;;  %v4034_v59 = vpack.c.bf16 %v3637_v41, %v3636_v57 }
 0x8fb   :  { %3879 = vmatmul.mubr.msk.f32.vlgmr.msra.gmra.mrb[42].mxu1 %vm1574_vm4, %v2065_v15 }
 0x8fc   :  { %3882 = vmatpush3.bf16.msra.mxu1 %v4336_v14  ;;  %3885 = vmatprep.mubr.msk.bf16.mxu1 %vm4375_vm1, %v4374_v1 }
 0x8fd   :  { %3883 = vmatprep.subr.bf16.mxu1 %v4374_v1 }
 0x900   :  { %3884 = vmatpush3.bf16.msra.mxu1 %v4337_v12  ;;  %v4344_v12 = vld [vmem:[%s5512_s21 + $0x20] sm:$0xff]  }
 0x901   :  { %3889 = vmatprep.subr.bf16.mxu1 %v4374_v1 }
 0x9ce   :  { %v2154_v4 = vpop.f32.mrb[42].mxu1 }
 0x9cf   :  { %v5230_v18 = vadd.f32 %v2154_v4, %v2082_v2  ;;  %v3880_v20 = vpop.f32.mrb[43].mxu1  ;;  %v4345_v2 = vld [vmem:[%s5512_s21 + $0x28] sm:$0xff]   ;;  %v2565_v4 = vpop.permute.xlu1 %2564 }
 0x9d1   :  { %v2164_v22 = vpack.c.bf16 %v5230_v18, %v5230_v18  ;;  %v2468_v11 = vmul.f32 %v3635_v9, %v5230_v18  ;;  %v4350_v9 = vld [vmem:[%s5512_s21 + $0x30] sm:$0xff]  }
 0x9d3   :  { %3886 = vmatmul.mubr.msk.bf16.vlgmr.msra.gmra.mrb[44].mxu1 %vm1514_vm3, %v2164_v22 }
 0x9d4   :  { %3890 = vmatpush3.bf16.msra.mxu1 %v4338_v21  ;;  %3893 = vmatprep.mubr.msk.bf16.mxu1 %vm4375_vm1, %v4374_v1 }
 0x9d5   :  { %3891 = vmatprep.subr.bf16.mxu1 %v4374_v1 }
 0x9d8   :  { %3892 = vmatpush3.bf16.msra.mxu1 %v4339_v23 }
 0x9d9   :  { %3897 = vmatprep.subr.bf16.mxu1 %v4374_v1 }
 0xaa6   :  { %v2218_v25 = vpop.f32.mrb[44].mxu1 }
 0xaa7   :  { %v2219_v19 = vadd.f32 %v2218_v25, %v2179_v24  ;;  %v3887_v16 = vpop.f32.mrb[45].mxu1 }
 0xaa8   :  { %v2221_v26 = vpop.f32.mrb[46].mxu1  ;;  %v4347_v16 = vld [vmem:[%s5513_s23 + $0x28] sm:$0xff]  }
 0xaa9   :  { %v2224_v27 = vmax.f32 %v2219_v19, 0.0  ;;  %v3888_v28 = vpop.f32.mrb[47].mxu1  ;;  %v4346_v19 = vld [vmem:[%s5513_s23 + $0x20] sm:$0xff]  }
 0xaaa   :  { %v3651_v26 = vld [vmem:[%s5514_s22 + $0x2] ss:$0 sm:$0xff] }
 0xaab   :  { %v2230_v29 = vpack.c.bf16 %v2224_v27, %v2224_v27 }
 0xaad   :  { %3894 = vmatmul.mubr.msk.bf16.vlgmr.msra.gmra.mrb[48].mxu1 %vm1514_vm3, %v2230_v29 }
 0xaae   :  { %3901 = vmatprep.mubr.msk.bf16.mxu1 %vm4375_vm1, %v4374_v1  ;;  %3898 = vmatpush3.bf16.msra.mxu1 %v4340_v30 }
 0xaaf   :  { %3899 = vmatprep.subr.bf16.mxu1 %v4374_v1 }
 0xab2   :  { %3900 = vmatpush3.bf16.msra.mxu1 %v4341_v31 }
 0xab3   :  { %4027 = vmatprep.subr.bf16.mxu1 %v4378_v39 }
 0xb80   :  { %v2288_v33 = vpop.f32.mrb[48].mxu1 }
 0xb81   :  { %v2289_v34 = vadd.f32 %v3616_v32, %v2288_v33  ;;  %v3895_v35 = vpop.f32.mrb[49].mxu1  ;;  %v3664_v33 = vld [vmem:[%s5515_s18 + $0x40] sm:$0xff] }
 0xb82   :  { %v2291_v36 = vpop.f32.mrb[50].mxu1 }
 0xb83   :  { %v2294_v37 = vmax.f32 %v2289_v34, 0.0  ;;  %v3896_v38 = vpop.f32.mrb[51].mxu1  ;;  %v3665_v34 = vld [vmem:[%s5515_s18 + $0x48] sm:$0xff] }
 0xb84   :  { %v4037_v36 = vpack.c.bf16 %v3665_v34, %v3664_v33  ;;  %v3666_v38 = vld [vmem:[%s5515_s18 + $0x50] sm:$0xff]  ;;  %v3702_v34 = vld [vmem:[%s5515_s18 + $0x78] sm:$0xff] }
 0xb85   :  { %v2295_v43 = vadd.f32 %v2294_v37, %v2224_v27  ;;  %v4040_v42 = vpack.c.bf16 %v3667_v40, %v3666_v38  ;;  %v3701_v33 = vld [vmem:[%s5515_s18 + $0x70] sm:$0xff] }
 0xb87   :  { %v2301_v45 = vpack.c.bf16 %v2295_v43, %v2295_v43  ;;  %v3660_v43 = vld [vmem:[%s5516_s24 + $0x2] ss:$0 sm:$0xff] }
 0xb89   :  { %3902 = vmatmul.mubr.msk.bf16.vlgmr.msra.gmra.mrb[52].mxu1 %vm1514_vm3, %v2301_v45 }
 0xb8a   :  { %4029 = vmatpush3.bf16.msra.mxu1 %v4028_v44  ;;  %3913 = vmatprep.mubr.msk.f32.mxu1 %vm4375_vm1, %v4374_v1 }
 0xb8b   :  { %4030 = vmatprep.subr.bf16.mxu1 %v4378_v39 }
 0xb8e   :  { %4032 = vmatpush3.bf16.msra.mxu1 %v4031_v48 }
 0xb8f   :  { %4033 = vmatprep.subr.bf16.mxu1 %v4378_v39 }
 0xb91   :  { %3914 = vmatmul.mubr.msk.f32.vlgmr.msra.gmra.mrb[56].mxu1 %vm1514_vm3, %v5230_v18 }
 0xb92   :  { %3920 = vmatprep.mubr.msk.f32.mxu1 %vm4375_vm1, %v4374_v1  ;;  %4035 = vmatpush3.bf16.msra.mxu1 %v4034_v59  ;;  %v4348_v59 = vld [vmem:[%s5510_s17 + $0x30] sm:$0xff]  }
 0xb93   :  { %3923 = vmatprep.subr.bf16.mxu1 %v4374_v1 }
 0xc5c   :  { %v2359_v50 = vpop.f32.mrb[52].mxu1 }
 0xc5d   :  { %v2360_v51 = vadd.f32 %v3625_v49, %v2359_v50  ;;  %v3903_v52 = vpop.f32.mrb[53].mxu1 }
 0xc5e   :  { %v2362_v53 = vpop.f32.mrb[54].mxu1  ;;  %v3672_v52 = vld [vmem:[%s5517_s19 + $0x28] sm:$0xff] }
 0xc5f   :  { %4360 = vtanh.f32 %v2360_v51  ;;  %v3904_v54 = vpop.f32.mrb[55].mxu1 }
 0xc64   :  { %v2440_v55 = vpop.f32.mrb[56].mxu1 }
 0xc65   :  { %v3915_v56 = vpop.f32.mrb[57].mxu1 }
 0xc69   :  { %v5289_v58 = vpop.eup %4360 }
 0xc6a   :  { %v2444_v60 = vmul.f32 1.442695, %v5289_v58 }
 0xc6c   :  { %4362 = vpow2.f32 %v2444_v60 }
 0xc76   :  { %v4363_v62 = vpop.eup %4362 }
 0xc77   :  { %2447 = vrot.lane.b32.xlu0 %v4363_v62, %s4379_s11  ;;  %v4349_v62 = vld [vmem:[%s5510_s17 + $0x38] sm:$0xff]  }
 0xce9   :  { %v2448_v63 = vpop.permute.xlu0 %2447 }
 0xcea   :  { %v2450_v0 = vmul.f32 %v2448_v63, %v2440_v55  ;;  %v3670_v63 = vld [vmem:[%s5518_s20 + $0x2] ss:$0 sm:$0xff] }
 0xcec   :  { %v2451_v6 = vadd.f32 %v2450_v0, %v2360_v51  ;;  %v3671_v51 = vld [vmem:[%s5517_s19 + $0x20] sm:$0xff] }
 0xced   :  { %v4043_v54 = vpack.c.bf16 %v3672_v52, %v3671_v51 }
 0xcee   :  { %3921 = vmatmul.mubr.msk.f32.vlgmr.msra.gmra.mrb[58].mxu1 %vm1574_vm4, %v2451_v6 }
 0xcef   :  { %3924 = vmatpush3.bf16.msra.mxu1 %v4342_v3  ;;  %3927 = vmatprep.mubr.msk.bf16.mxu1 %vm4375_vm1, %v4374_v1 }
 0xcf0   :  { %3925 = vmatprep.subr.bf16.mxu1 %v4374_v1 }
 0xcf3   :  { %3926 = vmatpush3.bf16.msra.mxu1 %v4343_v8 }
 0xcf4   :  { %3931 = vmatprep.subr.bf16.mxu1 %v4374_v1 }
 0xdc1   :  { %v2541_v13 = vpop.f32.mrb[58].mxu1 }
 0xdc2   :  { %v5309_v14 = vadd.f32 %v2541_v13, %v2468_v11  ;;  %v3922_v15 = vpop.f32.mrb[59].mxu1  ;;  %v4351_v13 = vld [vmem:[%s5512_s21 + $0x38] sm:$0xff]  }
 0xdc4   :  { %v2551_v10 = vpack.c.bf16 %v5309_v14, %v5309_v14  ;;  %v2854_v0 = vmul.f32 %v3670_v63, %v5309_v14 }
 0xdc6   :  { %3928 = vmatmul.mubr.msk.bf16.vlgmr.msra.gmra.mrb[60].mxu1 %vm1514_vm3, %v2551_v10 }
 0xdc7   :  { %3932 = vmatpush3.bf16.msra.mxu1 %v4344_v12  ;;  %3935 = vmatprep.mubr.msk.bf16.mxu1 %vm4375_vm1, %v4374_v1 }
 0xdc8   :  { %3933 = vmatprep.subr.bf16.mxu1 %v4374_v1 }
 0xdcb   :  { %3934 = vmatpush3.bf16.msra.mxu1 %v4345_v2 }
 0xdcc   :  { %3939 = vmatprep.subr.bf16.mxu1 %v4374_v1 }
 0xe99   :  { %v2604_v18 = vpop.f32.mrb[60].mxu1 }
 0xe9a   :  { %v2605_v20 = vadd.f32 %v2604_v18, %v2565_v4  ;;  %v3929_v21 = vpop.f32.mrb[61].mxu1 }
 0xe9b   :  { %v2607_v22 = vpop.f32.mrb[62].mxu1  ;;  %v4352_v21 = vld [vmem:[%s5513_s23 + $0x30] sm:$0xff]  }
 0xe9c   :  { %v2610_v23 = vmax.f32 %v2605_v20, 0.0  ;;  %v3930_v24 = vpop.f32.mrb[63].mxu1  ;;  %v4353_v22 = vld [vmem:[%s5513_s23 + $0x38] sm:$0xff]  }
 0xe9e   :  { %v2616_v25 = vpack.c.bf16 %v2610_v23, %v2610_v23 }
 0xea0   :  { %3936 = vmatmul.mubr.msk.bf16.vlgmr.msra.gmra.mrb[64].mxu1 %vm1514_vm3, %v2616_v25 }
 0xea1   :  { %3943 = vmatprep.mubr.msk.bf16.mxu1 %vm4375_vm1, %v4374_v1  ;;  %3940 = vmatpush3.bf16.msra.mxu1 %v4346_v19 }
 0xea2   :  { %3941 = vmatprep.subr.bf16.mxu1 %v4374_v1 }
 0xea5   :  { %3942 = vmatpush3.bf16.msra.mxu1 %v4347_v16 }
 0xea6   :  { %4036 = vmatprep.subr.bf16.mxu1 %v4378_v39 }
 0xf73   :  { %v2674_v27 = vpop.f32.mrb[64].mxu1 }
 0xf74   :  { %v2675_v28 = vadd.f32 %v3651_v26, %v2674_v27  ;;  %v3937_v29 = vpop.f32.mrb[65].mxu1 }
 0xf75   :  { %v2677_v30 = vpop.f32.mrb[66].mxu1  ;;  %v3700_v29 = vld [vmem:[%s5515_s18 + $0x68] sm:$0xff] }
 0xf76   :  { %v2680_v31 = vmax.f32 %v2675_v28, 0.0  ;;  %v3938_v32 = vpop.f32.mrb[67].mxu1  ;;  %v3699_v28 = vld [vmem:[%s5515_s18 + $0x60] sm:$0xff] }
 0xf78   :  { %v2681_v35 = vadd.f32 %v2680_v31, %v2610_v23  ;;  %v3686_v23 = vld [vmem:[%s5514_s22 + $0x3] ss:$0 sm:$0xff]  ;;  %v4046_v31 = vpack.c.bf16 %v3700_v29, %v3699_v28  ;;  %v3322_v29 = vld [vmem:[%s5520_s3] sm:$0x3] }
 0xf7a   :  { %v2687_v37 = vpack.c.bf16 %v2681_v35, %v2681_v35  ;;  %v4049_v35 = vpack.c.bf16 %v3702_v34, %v3701_v33 }
 0xf7c   :  { %3944 = vmatmul.mubr.msk.bf16.vlgmr.msra.gmra.mrb[68].mxu1 %vm1514_vm3, %v2687_v37 }
 0xf7d   :  { %4038 = vmatpush3.bf16.msra.mxu1 %v4037_v36  ;;  %3955 = vmatprep.mubr.msk.f32.mxu1 %vm4375_vm1, %v4374_v1  ;;  %v3695_v36 = vld [vmem:[%s5516_s24 + $0x3] ss:$0 sm:$0xff] }
 0xf7e   :  { %4039 = vmatprep.subr.bf16.mxu1 %v4378_v39 }
 0xf81   :  { %4041 = vmatpush3.bf16.msra.mxu1 %v4040_v42 }
 0xf82   :  { %4042 = vmatprep.subr.bf16.mxu1 %v4378_v39 }
 0xf84   :  { %3956 = vmatmul.mubr.msk.f32.vlgmr.msra.gmra.mrb[72].mxu1 %vm1514_vm3, %v5309_v14  ;;  %v2951_v14 = vpop.permute.xlu1 %2950 }
 0xf85   :  { %3962 = vmatprep.mubr.msk.f32.mxu1 %vm4375_vm1, %v4374_v1  ;;  %4044 = vmatpush3.bf16.msra.mxu1 %v4043_v54 }
 0xf86   :  { %3965 = vmatprep.subr.bf16.mxu1 %v4374_v1 }
0x104f   :  { %v2745_v44 = vpop.f32.mrb[68].mxu1 }
0x1050   :  { %v2746_v45 = vadd.f32 %v3660_v43, %v2745_v44  ;;  %v3945_v46 = vpop.f32.mrb[69].mxu1 }
0x1051   :  { %v2748_v47 = vpop.f32.mrb[70].mxu1  ;;  %v1768_v46 = vmul.f32 %v5113_v61, %v5113_v61 }
0x1052   :  { %4364 = vtanh.f32 %v2746_v45  ;;  %v3946_v48 = vpop.f32.mrb[71].mxu1  ;;  %v3706_v47 = vld [vmem:[%s5517_s19 + $0x30] sm:$0xff] }
0x1053   :  { %v3707_v48 = vld [vmem:[%s5517_s19 + $0x38] sm:$0xff]  ;;  %v1770_v52 = vsel %vm1769_vm5, %v1768_v46, 0.0 }
0x1054   :  { %1771 = vadd.xlane.f32.xlu1 %v1770_v52 }
0x1057   :  { %v2826_v49 = vpop.f32.mrb[72].mxu1 }
0x1058   :  { %v3957_v50 = vpop.f32.mrb[73].mxu1 }
0x1059   :  { %v4052_v50 = vpack.c.bf16 %v3707_v48, %v3706_v47 }
0x105c   :  { %v5368_v53 = vpop.eup %4364 }
0x105d   :  { %v2830_v55 = vmul.f32 1.442695, %v5368_v53 }
0x105f   :  { %4366 = vpow2.f32 %v2830_v55 }
0x1069   :  { %v4367_v56 = vpop.eup %4366 }
0x106a   :  { %2833 = vrot.lane.b32.xlu0 %v4367_v56, %s4379_s11 }
0x10dc   :  { %v2834_v57 = vpop.permute.xlu0 %2833 }
0x10dd   :  { %v2836_v41 = vmul.f32 %v2834_v57, %v2826_v49 }
0x10df   :  { %v2837_v60 = vadd.f32 %v2836_v41, %v2746_v45 }
0x10e1   :  { %3963 = vmatmul.mubr.msk.f32.vlgmr.msra.gmra.mrb[74].mxu1 %vm1574_vm4, %v2837_v60 }
0x10e2   :  { %3966 = vmatpush3.bf16.msra.mxu1 %v4348_v59  ;;  %3969 = vmatprep.mubr.msk.bf16.mxu1 %vm4375_vm1, %v4374_v1 }
0x10e3   :  { %3967 = vmatprep.subr.bf16.mxu1 %v4374_v1 }
0x10e6   :  { %3968 = vmatpush3.bf16.msra.mxu1 %v4349_v62 }
0x10e7   :  { %3973 = vmatprep.subr.bf16.mxu1 %v4374_v1 }
0x11b4   :  { %v2927_v3 = vpop.f32.mrb[74].mxu1 }
0x11b5   :  { %v5388_v6 = vadd.f32 %v2927_v3, %v2854_v0  ;;  %v3964_v8 = vpop.f32.mrb[75].mxu1  ;;  %v3318_v0 = vld [vmem:[%s5519_s25] sm:$0xff]  ;;  %v3319_v3 = vld [vmem:[%s5519_s25 + $0x8] sm:$0xff] }
0x11b6   :  { %v4055_v8 = vpack.c.bf16 %v3319_v3, %v3318_v0 }
0x11b7   :  { %v2937_v11 = vpack.c.bf16 %v5388_v6, %v5388_v6 }
0x11b9   :  { %3970 = vmatmul.mubr.msk.bf16.vlgmr.msra.gmra.mrb[76].mxu1 %vm1514_vm3, %v2937_v11  ;;  %v3321_v11 = vld [vmem:[%s5519_s25 + $0x18] sm:$0xff] }
0x11ba   :  { %3974 = vmatpush3.bf16.msra.mxu1 %v4350_v9  ;;  %3977 = vmatprep.mubr.msk.bf16.mxu1 %vm4375_vm1, %v4374_v1  ;;  %v3320_v9 = vld [vmem:[%s5519_s25 + $0x10] sm:$0xff] }
0x11bb   :  { %3975 = vmatprep.subr.bf16.mxu1 %v4374_v1 }
0x11be   :  { %3976 = vmatpush3.bf16.msra.mxu1 %v4351_v13  ;;  %v4058_v13 = vpack.c.bf16 %v3321_v11, %v3320_v9 }
0x11bf   :  { %3981 = vmatprep.subr.bf16.mxu1 %v4374_v1 }
0x128c   :  { %v2990_v15 = vpop.f32.mrb[76].mxu1 }
0x128d   :  { %v2991_v12 = vadd.f32 %v2990_v15, %v2951_v14  ;;  %v3971_v10 = vpop.f32.mrb[77].mxu1  ;;  %v3705_v14 = vld [vmem:[%s5518_s20 + $0x3] ss:$0 sm:$0xff] }
0x128e   :  { %v2993_v2 = vpop.f32.mrb[78].mxu1  ;;  %v3240_v15 = vmul.f32 %v3705_v14, %v5388_v6 }
0x128f   :  { %v2996_v4 = vmax.f32 %v2991_v12, 0.0  ;;  %v3972_v18 = vpop.f32.mrb[79].mxu1 }
0x1291   :  { %v3002_v20 = vpack.c.bf16 %v2996_v4, %v2996_v4 }
0x1293   :  { %3978 = vmatmul.mubr.msk.bf16.vlgmr.msra.gmra.mrb[80].mxu1 %vm1514_vm3, %v3002_v20 }
0x1294   :  { %3985 = vmatprep.mubr.msk.bf16.mxu1 %vm4375_vm1, %v4374_v1  ;;  %3982 = vmatpush3.bf16.msra.mxu1 %v4352_v21 }
0x1295   :  { %3983 = vmatprep.subr.bf16.mxu1 %v4374_v1 }
0x1298   :  { %3984 = vmatpush3.bf16.msra.mxu1 %v4353_v22 }
0x1299   :  { %4045 = vmatprep.subr.bf16.mxu1 %v4378_v39 }
0x1366   :  { %v3060_v24 = vpop.f32.mrb[80].mxu1 }
0x1367   :  { %v3061_v25 = vadd.f32 %v3686_v23, %v3060_v24  ;;  %v3979_v19 = vpop.f32.mrb[81].mxu1 }
0x1368   :  { %v3063_v16 = vpop.f32.mrb[82].mxu1 }
0x1369   :  { %v3066_v26 = vmax.f32 %v3061_v25, 0.0  ;;  %v3980_v27 = vpop.f32.mrb[83].mxu1 }
0x136b   :  { %v3067_v30 = vadd.f32 %v3066_v26, %v2996_v4  ;;  %v3397_v26 = vand.u32 127, %v232_v7 }
0x136d   :  { %v3073_v32 = vpack.c.bf16 %v3067_v30, %v3067_v30  ;;  %vm3398_vm7 = vcmp.eq.s32.totalorder %v3397_v26, 32 }
0x136e   :  { %v3710_v30 = vsel %vm3398_vm7, 1.0, %v4374_v1 }
0x136f   :  { %3986 = vmatmul.mubr.msk.bf16.vlgmr.msra.gmra.mrb[84].mxu1 %vm1514_vm3, %v3073_v32 }
0x1370   :  { %4047 = vmatpush3.bf16.msra.mxu1 %v4046_v31  ;;  %3997 = vmatprep.mubr.msk.f32.mxu1 %vm4375_vm1, %v4374_v1 }
0x1371   :  { %4048 = vmatprep.subr.bf16.mxu1 %v4378_v39 }
0x1374   :  { %4050 = vmatpush3.bf16.msra.mxu1 %v4049_v35 }
0x1375   :  { %4051 = vmatprep.subr.bf16.mxu1 %v4378_v39 }
0x1377   :  { %3998 = vmatmul.mubr.msk.f32.vlgmr.msra.gmra.mrb[88].mxu1 %vm1514_vm3, %v5388_v6 }
0x1378   :  { %4004 = vmatprep.mubr.msk.f32.mxu1 %vm4375_vm1, %v4374_v1  ;;  %4053 = vmatpush3.bf16.msra.mxu1 %v4052_v50 }
0x1379   :  { %4054 = vmatprep.subr.bf16.mxu1 %v4378_v39 }
0x1442   :  { %v3131_v37 = vpop.f32.mrb[84].mxu1 }
0x1443   :  { %v3132_v38 = vadd.f32 %v3695_v36, %v3131_v37  ;;  %v3987_v40 = vpop.f32.mrb[85].mxu1 }
0x1444   :  { %v3134_v42 = vpop.f32.mrb[86].mxu1 }
0x1445   :  { %4368 = vtanh.f32 %v3132_v38  ;;  %v3988_v43 = vpop.f32.mrb[87].mxu1 }
0x144a   :  { %v3212_v44 = vpop.f32.mrb[88].mxu1 }
0x144b   :  { %v3999_v45 = vpop.f32.mrb[89].mxu1 }
0x144f   :  { %v4369_v49 = vpop.eup %4368 }
0x1450   :  { %v3216_v51 = vmul.f32 1.442695, %v4369_v49 }
0x1452   :  { %4370 = vpow2.f32 %v3216_v51 }
0x145c   :  { %v4371_v61 = vpop.eup %4370 }
0x145d   :  { %3219 = vrot.lane.b32.xlu0 %v4371_v61, %s4379_s11 }
0x1461   :  { %2067 = vrot.lane.b32.xlu0 %v5205_v5, %s4379_s11 }
0x1465   :  { %2453 = vrot.lane.b32.xlu0 %v5289_v58, %s4379_s11 }
0x1469   :  { %1775 = vrot.lane.b32.xlu0 %v5136_v17, %s4377_s16 }
0x146d   :  { %2839 = vrot.lane.b32.xlu0 %v5368_v53, %s4379_s11 }
0x1471   :  { %3225 = vrot.lane.b32.xlu0 %v4369_v49, %s4379_s11 }
0x14cf   :  { %v3220_v54 = vpop.permute.xlu0 %3219 }
0x14d0   :  { %v3222_v55 = vmul.f32 %v3220_v54, %v3212_v44 }
0x14d2   :  { %v3223_v56 = vadd.f32 %v3222_v55, %v3132_v38 }
0x14d3   :  { %v2068_v57 = vpop.permute.xlu0 %2067 }
0x14d4   :  { %4005 = vmatmul.mubr.msk.f32.vlgmr.msra.gmra.mrb[90].mxu1 %vm1574_vm4, %v3223_v56  ;;  %v2071_v5 = vsel %vm2070_vm6, %v2068_v57, 0.0 }
0x14d5   :  { %2072 = vadd.xlane.f32.xlu1 %v2071_v5  ;;  %4015 = vmatprep.mubr.msk.f32.mxu1 %vm4375_vm1, %v4374_v1 }
0x14d6   :  { %4056 = vmatpush3.bf16.msra.mxu1 %v4055_v8 }
0x14d7   :  { %v2454_v58 = vpop.permute.xlu0 %2453  ;;  %4057 = vmatprep.subr.bf16.mxu1 %v4378_v39  ;;  %v1772_v39 = vpop.xlane.xlu1 %1771 }
0x14d8   :  { %v2456_v17 = vsel %vm2070_vm6, %v2454_v58, 0.0  ;;  %v1773_v21 = vmul.f32 -0.5, %v1772_v39 }
0x14d9   :  { %2457 = vadd.xlane.f32.xlu1 %v2456_v17 }
0x14da   :  { %4059 = vmatpush3.bf16.msra.mxu1 %v4058_v13 }
0x14db   :  { %v1776_v53 = vpop.permute.xlu0 %1775 }
0x14dc   :  { %v1778_v41 = vsel %vm1769_vm5, %v1776_v53, 0.0 }
0x14dd   :  { %1779 = vadd.xlane.f32.xlu0 %v1778_v41 }
0x14df   :  { %v2840_v59 = vpop.permute.xlu0 %2839 }
0x14e0   :  { %v2842_v60 = vsel %vm2070_vm6, %v2840_v59, 0.0 }
0x14e1   :  { %2843 = vadd.xlane.f32.xlu1 %v2842_v60 }
0x14e3   :  { %v3226_v62 = vpop.permute.xlu0 %3225 }
0x14e4   :  { %v3228_v63 = vsel %vm2070_vm6, %v3226_v62, 0.0 }
0x14e5   :  { %3229 = vadd.xlane.f32.xlu1 %v3228_v63 }
0x1562   :  { %v2073_v4 = vpop.xlane.xlu1 %2072 }
0x1563   :  { %v2074_v22 = vsub.f32 0.0, %v2073_v4 }
0x1566   :  { %v2458_v18 = vpop.xlane.xlu1 %2457 }
0x1567   :  { %v2459_v24 = vsub.f32 %v2074_v22, %v2458_v18 }
0x156a   :  { %v1780_v23 = vpop.xlane.xlu0 %1779 }
0x156b   :  { %v1781_v19 = vsub.f32 %v1773_v21, %v1780_v23 }
0x156d   :  { %v3589_v6 = vadd.f32 -29.406033, %v1781_v19 }
0x156e   :  { %v2844_v20 = vpop.xlane.xlu1 %2843 }
0x156f   :  { %v2845_v16 = vsub.f32 %v2459_v24, %v2844_v20 }
0x1572   :  { %v3230_v25 = vpop.xlane.xlu1 %3229 }
0x1573   :  { %v3231_v27 = vsub.f32 %v2845_v16, %v3230_v25 }
0x1575   :  { %v3401_v28 = vadd.f32 %v3589_v6, %v3231_v27 }
0x1577   :  { %v3402_v33 = vmul.f32 %v3710_v30, %v3401_v28 }
0x15a7   :  { %v3313_v12 = vpop.f32.mrb[90].mxu1 }
0x15a8   :  { %v3317_v10 = vadd.f32 %v3313_v12, %v3240_v15  ;;  %v4006_v2 = vpop.f32.mrb[91].mxu1 }
0x15aa   :  { %4016 = vmatmul.mubr.msk.f32.vlgmr.msra.gmra.mrb[92].mxu1 %vm1514_vm3, %v3317_v10 }
0x167d   :  { %v3392_v31 = vpop.f32.mrb[92].mxu1 }
0x167e   :  { %v3393_v32 = vadd.f32 %v3392_v31, %v3322_v29  ;;  %v4017_v34 = vpop.f32.mrb[93].mxu1 }
0x1680   :  { %v3403_v35 = vadd.f32 %v3402_v33, %v3393_v32 }
0x1682   :  { %3404 = vst [vmem:[%s5521_s26] sm:$0x3] %v3403_v35 }

</bundles_post_ra>
